<compile_context>
chip_gen: v5e
topology: v5e:2x2
jax: 0.10.0
libtpu: 0.0.40
codegen_flags: <defaults>
</compile_context>

<pallas_src>
import jax
import jax.numpy as jnp
from jax.experimental import pallas as pl
from jax.experimental.pallas import tpu as pltpu

LANE = 128  # TPU vreg lane width


def _round_up(n, m):
    return (n + m - 1) // m * m


# ----------------------------------------------------------------------------
# Fused kernel: encoder projection + MLP (Linear -> ReLU -> [Dropout] -> Linear)
# ----------------------------------------------------------------------------
def _fused_kernel(x_ref, we_ref, be_ref, w1_ref, b1_ref, w2_ref, b2_ref, o_ref):
    # Stage 1 -- stand-in vision encoder, computed with a block-diagonal weight:
    #   (bs, nf*chw) @ (nf*chw, nf*E_pad) -> lane-concatenated embeddings.
    # This IS the (bs, num_frames*embed_dim) regroup of the reference module,
    # so no in-kernel reshape/transpose is needed.  x is cast f32->bf16 on the
    # VPU here (no HBM pre-pass in the wrapper).
    x = x_ref[...].astype(jnp.bfloat16)
    emb = (
        jnp.dot(x, we_ref[...], preferred_element_type=jnp.float32)
        + be_ref[...]
    )  # (bs, nf*E_pad) f32 -- stays in vregs/VMEM, never hits HBM.

    # Stage 2 -- first MLP Linear + ReLU as a single K = nf*E_pad dot
    # (full 256-deep MXU push on v6e/v7x; split automatically on v5e).
    h = jnp.maximum(
        jnp.dot(emb.astype(jnp.bfloat16), w1_ref[...],
                preferred_element_type=jnp.float32)
        + b1_ref[...],
        0.0,
    )
    # Dropout(p=0.5): identity in eval mode.
    # TODO(synk): training-mode dropout would use pltpu.prng_seed /
    # pltpu.prng_random_bits with 1/(1-p) scaling.

    # Stage 3 -- second MLP Linear -> logits (lane-dense, padded to 128 cols).
    o_ref[...] = (
        jnp.dot(h.astype(jnp.bfloat16), w2_ref[...],
                preferred_element_type=jnp.float32)
        + b2_ref[...]
    )


# ----------------------------------------------------------------------------
# One-time parameter preparation (padding + bf16 casting hoisted out of forward)
# ----------------------------------------------------------------------------
def prepare_params(params, num_frames):
    """Pad / cast all weights ONCE at init; forward does no per-call weight work."""
    chw, embed_dim = params["w_enc"].shape
    feat, hidden_dim = params["w1"].shape
    num_classes = params["w2"].shape[1]
    assert feat == num_frames * embed_dim

    e_p = _round_up(embed_dim, LANE)
    h_p = _round_up(hidden_dim, LANE)
    c_p = _round_up(num_classes, LANE)

    # Block-diagonal encoder weight (nf*chw, nf*e_p): frame f's pixels map only
    # to frame f's E_pad-wide lane block, giving lane-concatenated embeddings.
    w_bd = jnp.zeros((num_frames * chw, num_frames * e_p), jnp.float32)
    for f in range(num_frames):
        w_bd = w_bd.at[f * chw:(f + 1) * chw,
                       f * e_p:f * e_p + embed_dim].set(params["w_enc"])

    b_enc = jnp.pad(params["b_enc"], ((0, 0), (0, e_p - embed_dim)))
    b_enc = jnp.tile(b_enc, (1, num_frames))  # (1, nf*e_p) f32

    # W1: (nf*E, H) -> (nf*e_p, h_p) keeping per-frame row blocks aligned at e_p
    # so padded embedding lanes hit zero weight rows.
    w1 = params["w1"].reshape(num_frames, embed_dim, hidden_dim)
    w1 = jnp.pad(w1, ((0, 0), (0, e_p - embed_dim), (0, h_p - hidden_dim)))
    w1 = w1.reshape(num_frames * e_p, h_p)

    w2 = jnp.pad(params["w2"], ((0, h_p - hidden_dim), (0, c_p - num_classes)))

    kparams = {
        "w_enc_bd": w_bd.astype(jnp.bfloat16),
        "b_enc": b_enc,
        "w1": w1.astype(jnp.bfloat16),
        "b1": jnp.pad(params["b1"], ((0, 0), (0, h_p - hidden_dim))),
        "w2": w2.astype(jnp.bfloat16),
        "b2": jnp.pad(params["b2"], ((0, 0), (0, c_p - num_classes))),
    }
    meta = {
        "num_frames": num_frames, "chw": chw, "embed_dim": embed_dim,
        "num_classes": num_classes, "e_p": e_p, "h_p": h_p, "c_p": c_p,
    }
    return kparams, meta


# ----------------------------------------------------------------------------
# Forward: hot path is reshape(x) + one fused pallas_call + output slice
# ----------------------------------------------------------------------------
def turn_classifier_forward(x, kparams, meta):
    """x: (bs, num_frames, c, h, w) float32 -> (bs, num_classes) float32."""
    bs, num_frames, c, h, w = x.shape
    chw = c * h * w
    assert num_frames == meta["num_frames"] and chw == meta["chw"]

    # Free contiguous flatten -- no transpose / pad / cast of x in the hot path.
    x2d = x.reshape(bs, num_frames * chw)

    nf_ep = num_frames * meta["e_p"]
    h_p, c_p = meta["h_p"], meta["c_p"]

    flops = 2 * bs * (num_frames * chw * nf_ep + nf_ep * h_p + h_p * c_p)
    bytes_accessed = (
        x2d.size * 4
        + sum(int(v.size) * v.dtype.itemsize for v in kparams.values())
        + bs * c_p * 4
    )

    vmem = pl.BlockSpec(memory_space=pltpu.MemorySpace.VMEM)
    out = pl.pallas_call(
        _fused_kernel,
        out_shape=jax.ShapeDtypeStruct((bs, c_p), jnp.float32),
        in_specs=[vmem] * 7,
        out_specs=vmem,
        cost_estimate=pl.CostEstimate(
            flops=flops, transcendentals=0, bytes_accessed=bytes_accessed),
    )(x2d, kparams["w_enc_bd"], kparams["b_enc"], kparams["w1"],
      kparams["b1"], kparams["w2"], kparams["b2"])

    # NOTE: for large batched callers (M >= 128/256) add a row-tiled grid with
    # dimension_semantics=("parallel",) to shard across v7x's two TensorCores.
    return out[:, :meta["num_classes"]]


# ----------------------------------------------------------------------------
# Deterministic parameter init (f32 masters; padding/casting in prepare_params)
# ----------------------------------------------------------------------------
def init_params(key, c, h, w, embed_dim, num_frames, hidden_dim, num_classes):
    k0, k1, k2, k3, k4, k5 = jax.random.split(key, 6)
    chw = c * h * w
    feat = embed_dim * num_frames
    scale = lambda fan_in: 1.0 / jnp.sqrt(jnp.float32(fan_in))
    return {
        "w_enc": jax.random.normal(k0, (chw, embed_dim), jnp.float32) * scale(chw),
        "b_enc": jax.random.normal(k1, (1, embed_dim), jnp.float32) * 0.01,
        "w1": jax.random.normal(k2, (feat, hidden_dim), jnp.float32) * scale(feat),
        "b1": jax.random.normal(k3, (1, hidden_dim), jnp.float32) * 0.01,
        "w2": jax.random.normal(k4, (hidden_dim, num_classes), jnp.float32) * scale(hidden_dim),
        "b2": jax.random.normal(k5, (1, num_classes), jnp.float32) * 0.01,
    }


# ----------------------------------------------------------------------------
# Main
# ----------------------------------------------------------------------------
if __name__ == "__main__":
    bs, num_frames, c, h, w = 2, 2, 3, 16, 16
    embed_dim, hidden_dim, num_classes = 32, 32, 4

    key = jax.random.PRNGKey(0)
    kx, kp = jax.random.split(key)
    x = jax.random.normal(kx, (bs, num_frames, c, h, w), jnp.float32)
    params = init_params(kp, c, h, w, embed_dim, num_frames, hidden_dim, num_classes)

    # One-time weight padding / bf16 casting (hoisted out of the forward).
    kparams, meta = prepare_params(params, num_frames)
    jax.block_until_ready(kparams["w_enc_bd"])

    logits = turn_classifier_forward(x, kparams, meta)
    jax.block_until_ready(logits)

    # Pure-JAX reference using the same precision path
    # (bf16 matmul operands, f32 accumulation) to validate the kernel math.
    x_flat = x.reshape(bs * num_frames, c * h * w)
    emb_ref = (
        jnp.dot(x_flat.astype(jnp.bfloat16), params["w_enc"].astype(jnp.bfloat16),
                preferred_element_type=jnp.float32)
        + params["b_enc"]
    )
    emb_ref = emb_ref.reshape(bs, num_frames * embed_dim)
    h_ref = jnp.maximum(
        jnp.dot(emb_ref.astype(jnp.bfloat16), params["w1"].astype(jnp.bfloat16),
                preferred_element_type=jnp.float32)
        + params["b1"],
        0.0,
    )
    ref = (
        jnp.dot(h_ref.astype(jnp.bfloat16), params["w2"].astype(jnp.bfloat16),
                preferred_element_type=jnp.float32)
        + params["b2"]
    )

    assert logits.shape == (bs, num_classes)
    assert jnp.allclose(logits, ref, atol=2e-2, rtol=2e-2), (
        float(jnp.max(jnp.abs(logits - ref)))
    )

    print("KERNEL_OK")
</pallas_src>

<mosaic_0001>
module attributes {stable_mosaic.version = 11 : i64} {
  func.func @_fused_kernel(%arg0: memref<2x1536xf32, #tpu.memory_space<vmem>>, %arg1: memref<1536x256xbf16, #tpu.memory_space<vmem>>, %arg2: memref<1x256xf32, #tpu.memory_space<vmem>>, %arg3: memref<256x128xbf16, #tpu.memory_space<vmem>>, %arg4: memref<1x128xf32, #tpu.memory_space<vmem>>, %arg5: memref<128x128xbf16, #tpu.memory_space<vmem>>, %arg6: memref<1x128xf32, #tpu.memory_space<vmem>>, %arg7: memref<2x128xf32, #tpu.memory_space<vmem>>) attributes {dimension_semantics = [], scalar_prefetch = 0 : i64, scratch_operands = 0 : i64, tpu.core_type = #tpu.core_type<tc>} {
    %c0 = arith.constant 0 : index
    %c0_0 = arith.constant 0 : index
    %0 = vector.load %arg0[%c0, %c0_0] : memref<2x1536xf32, #tpu.memory_space<vmem>>, vector<2x1536xf32>
    %1 = arith.truncf %0 : vector<2x1536xf32> to vector<2x1536xbf16>
    %c0_1 = arith.constant 0 : index
    %c0_2 = arith.constant 0 : index
    %2 = vector.load %arg1[%c0_1, %c0_2] : memref<1536x256xbf16, #tpu.memory_space<vmem>>, vector<1536x256xbf16>
    %cst = arith.constant dense<0.000000e+00> : vector<2x256xf32>
    %3 = tpu.matmul %1, %2, %cst {dimension_numbers = #tpu.dot_dimension_numbers<[1], [0], [0], [1], [0, 0, 1, 1], [], []>} : vector<2x1536xbf16>, vector<1536x256xbf16>, vector<2x256xf32> -> vector<2x256xf32>
    %c0_3 = arith.constant 0 : index
    %c0_4 = arith.constant 0 : index
    %4 = vector.load %arg2[%c0_3, %c0_4] : memref<1x256xf32, #tpu.memory_space<vmem>>, vector<1x256xf32>
    %5 = vector.broadcast %4 : vector<1x256xf32> to vector<2x256xf32>
    %6 = arith.addf %3, %5 : vector<2x256xf32>
    %7 = arith.truncf %6 : vector<2x256xf32> to vector<2x256xbf16>
    %c0_5 = arith.constant 0 : index
    %c0_6 = arith.constant 0 : index
    %8 = vector.load %arg3[%c0_5, %c0_6] : memref<256x128xbf16, #tpu.memory_space<vmem>>, vector<256x128xbf16>
    %cst_7 = arith.constant dense<0.000000e+00> : vector<2x128xf32>
    %9 = tpu.matmul %7, %8, %cst_7 {dimension_numbers = #tpu.dot_dimension_numbers<[1], [0], [0], [1], [0, 0, 1, 1], [], []>} : vector<2x256xbf16>, vector<256x128xbf16>, vector<2x128xf32> -> vector<2x128xf32>
    %c0_8 = arith.constant 0 : index
    %c0_9 = arith.constant 0 : index
    %10 = vector.load %arg4[%c0_8, %c0_9] : memref<1x128xf32, #tpu.memory_space<vmem>>, vector<1x128xf32>
    %11 = vector.broadcast %10 : vector<1x128xf32> to vector<2x128xf32>
    %12 = arith.addf %9, %11 : vector<2x128xf32>
    %cst_10 = arith.constant 0.000000e+00 : f32
    %13 = vector.broadcast %cst_10 : f32 to vector<2x128xf32>
    %14 = arith.maximumf %12, %13 : vector<2x128xf32>
    %15 = arith.truncf %14 : vector<2x128xf32> to vector<2x128xbf16>
    %c0_11 = arith.constant 0 : index
    %c0_12 = arith.constant 0 : index
    %16 = vector.load %arg5[%c0_11, %c0_12] : memref<128x128xbf16, #tpu.memory_space<vmem>>, vector<128x128xbf16>
    %cst_13 = arith.constant dense<0.000000e+00> : vector<2x128xf32>
    %17 = tpu.matmul %15, %16, %cst_13 {dimension_numbers = #tpu.dot_dimension_numbers<[1], [0], [0], [1], [0, 0, 1, 1], [], []>} : vector<2x128xbf16>, vector<128x128xbf16>, vector<2x128xf32> -> vector<2x128xf32>
    %c0_14 = arith.constant 0 : index
    %c0_15 = arith.constant 0 : index
    %18 = vector.load %arg6[%c0_14, %c0_15] : memref<1x128xf32, #tpu.memory_space<vmem>>, vector<1x128xf32>
    %19 = vector.broadcast %18 : vector<1x128xf32> to vector<2x128xf32>
    %20 = arith.addf %17, %19 : vector<2x128xf32>
    %c0_16 = arith.constant 0 : index
    %c0_17 = arith.constant 0 : index
    %21 = vector.load %arg7[%c0_16, %c0_17] : memref<2x128xf32, #tpu.memory_space<vmem>>, vector<2x128xf32>
    tpu.vector_store %arg7[%c0_16, %c0_17], %20 {strides = array<i32>} : memref<2x128xf32, #tpu.memory_space<vmem>>, vector<2x128xf32>,
    return
  }
}

</mosaic_0001>

<bundles_post_ra>
// kernel: tpu_custom_call.1
= control target key start
LH: loop header
LB: loop body
LE: loop exit
PB: predicated region body
PF: predicated region fallthrough
CT: control target
= control target key end

     0   :  { %12 = vsyncpa [#allocation3], 0  ;;  %s3250_s0 = inlined_call_operand.hbm [shape: f32[2,1536], index: 0, kind: input, shape index: {}]   ;;  %s3251_s1 = inlined_call_operand.hbm [shape: bf16[1536,256], index: 1, kind: input, shape index: {}]   ;;  %s3252_s2 = inlined_call_operand.hbm [shape: f32[1,256], index: 2, kind: input, shape index: {}]   ;;  %s3253_s3 = inlined_call_operand.hbm [shape: bf16[256,128], index: 3, kind: input, shape index: {}]   ;;  %s3254_s4 = inlined_call_operand.vmem [shape: f32[1,128], index: 4, kind: input, shape index: {}]   ;;  %s3255_s5 = inlined_call_operand.hbm [shape: bf16[128,128], index: 5, kind: input, shape index: {}]   ;;  %s3256_s6 = inlined_call_operand.vmem [shape: f32[1,128], index: 6, kind: input, shape index: {}]   ;;  %s3257_s7 = inlined_call_operand.hbm [shape: f32[2,128], index: 7, kind: output, shape index: {}]  }
   0x1   :  { %13 = vsyncpa [#allocation6], 0 }
   0x2   :  { %14 = vsyncpa [#allocation9], 0  ;;  %s31_s26 = sshll.u32 %s3251_s1, 4  ;;  %s32_s26 = int_to_ptr.hbm [resolvable:$true] %s31_s26 }
   0x3   :  { %15 = vsyncpa [#allocation4], 0  ;;  %s3124_s27 = smov [#allocation5]   ;;  %s55_s8 = sshll.u32 %s3253_s3, 4  ;;  %s56_s8 = int_to_ptr.hbm [resolvable:$true] %s55_s8 }
   0x4   :  { %s33_s28 = sshll.u32 %s3124_s27, 4  ;;  %s3125_s9 = smov 128   ;;  %s34_s28 = int_to_ptr.vmem [resolvable:$true] %s33_s28 }
   0x5   :  { %s3126_s10 = smov 8   ;;  %s3127_s11 = smov [#allocation8]  }
   0x6   :  { %39 = dma.hbm_to_vmem [thread:$0]  %s32_s26, 24576, %s34_s28, [#allocation6], %s3125_s9, %s3125_s9, %s3126_s10  }
   0x7   :  { %s57_s12 = sshll.u32 %s3127_s11, 4  ;;  %s3128_s13 = smov 64   ;;  %s58_s12 = int_to_ptr.vmem [resolvable:$true] %s57_s12 }
   0x8   :  { %s3129_s14 = smov 4   ;;  %s21_s16 = sshll.u32 %s3250_s0, 4  ;;  %s22_s16 = int_to_ptr.hbm [resolvable:$true] %s21_s16 }
   0x9   :  { %63 = dma.hbm_to_vmem [thread:$0]  %s56_s8, 2048, %s58_s12, [#allocation9], %s3128_s13, %s3128_s13, %s3129_s14  }
   0xa   :  { %s3130_s17 = smov [#allocation2]   ;;  %s45_s20 = sshll.u32 %s3252_s2, 4  ;;  %s46_s20 = int_to_ptr.hbm [resolvable:$true] %s45_s20 }
   0xb   :  { %s23_s18 = sshll.u32 %s3130_s17, 4  ;;  %s3131_s21 = smov [#allocation7]   ;;  %s24_s18 = int_to_ptr.vmem [resolvable:$true] %s23_s18 }
   0xc   :  { %26 = dma.hbm_to_vmem [thread:$0]  %s22_s16, 384, %s24_s18, [#allocation3]  }
   0xd   :  { %s47_s22 = sshll.u32 %s3131_s21, 4  ;;  %s70_s25 = sshll.u32 %s3255_s5, 4  ;;  %s48_s22 = int_to_ptr.vmem [resolvable:$true] %s47_s22  ;;  %s71_s25 = int_to_ptr.hbm [resolvable:$true] %s70_s25 }
   0xe   :  { %50 = dma.hbm_to_vmem [thread:$0]  %s46_s20, 32, %s48_s22, [#allocation6]  }
   0xf   :  { %s3132_s0 = smov [#allocation10]  }
  0x10   :  { %s72_s26 = sshll.u32 %s3132_s0, 4  ;;  %s73_s26 = int_to_ptr.vmem [resolvable:$true] %s72_s26 }
  0x11   :  { %78 = dma.hbm_to_vmem [thread:$0]  %s71_s25, 1024, %s73_s26, [#allocation9], %s3128_s13, %s3128_s13, %s3129_s14  }
  0x12   :  { %3116 = dma.done.wait [#allocation3], 384  }
  0x13   :  { %3117 = vsyncadd [#allocation3], 4294966912 }
  0x14   :  { %3118 = dma.done.wait [#allocation6], 24608  }
  0x15   :  { %3119 = vsyncadd [#allocation6], 4294942688 }
  0x16   :  { %3120 = dma.done.wait [#allocation9], 3072  }
  0x17   :  { %3121 = vsyncadd [#allocation9], 4294964224  ;;  %v1938_v0 = vld [vmem:[#allocation5 + $0x70] sm:$0xf]  ;;  %v2759_v1 = vld [vmem:[#allocation5 + $0x74] sm:$0xf0] }
  0x18   :  { %v2002_v2 = vld [vmem:[#allocation5 + $0xf0] sm:$0xf]  ;;  %v1939_v3 = vor.u32 %v2759_v1, %v1938_v0  ;;  %v2775_v4 = vld [vmem:[#allocation5 + $0xf4] sm:$0xf0]  ;;  %v1930_v11 = vld [vmem:[#allocation5 + $0x60] sm:$0xf] }
  0x19   :  { %v2066_v5 = vld [vmem:[#allocation5 + $0x170] sm:$0xf]  ;;  %v2791_v6 = vld [vmem:[#allocation5 + $0x174] sm:$0xf0]  ;;  %v2003_v7 = vor.u32 %v2775_v4, %v2002_v2  ;;  %v2757_v13 = vld [vmem:[#allocation5 + $0x64] sm:$0xf0] }
  0x1a   :  { %v2067_v8 = vor.u32 %v2791_v6, %v2066_v5  ;;  %v2130_v9 = vld [vmem:[#allocation5 + $0x1f0] sm:$0xf]  ;;  %v2807_v10 = vld [vmem:[#allocation5 + $0x1f4] sm:$0xf0]  ;;  %1305 = vmatpush.bf16.msra.mxu0 %v1939_v3  ;;  %v1994_v14 = vld [vmem:[#allocation5 + $0xe0] sm:$0xf]  ;;  %v1931_v16 = vor.u32 %v2757_v13, %v1930_v11 }
  0x1b   :  { %v2131_v12 = vor.u32 %v2807_v10, %v2130_v9  ;;  %v2773_v15 = vld [vmem:[#allocation5 + $0xe4] sm:$0xf0]  ;;  %1318 = vmatpush.bf16.msra.mxu1 %v2003_v7  ;;  %v2058_v18 = vld [vmem:[#allocation5 + $0x160] sm:$0xf]  ;;  %v1922_v23 = vld [vmem:[#allocation5 + $0x50] sm:$0xf] }
  0x1c   :  { %1331 = vmatpush.bf16.msra.mxu2 %v2067_v8  ;;  %v1995_v17 = vor.u32 %v2773_v15, %v1994_v14  ;;  %v2789_v19 = vld [vmem:[#allocation5 + $0x164] sm:$0xf0]  ;;  %v2122_v20 = vld [vmem:[#allocation5 + $0x1e0] sm:$0xf]  ;;  %v2755_v24 = vld [vmem:[#allocation5 + $0x54] sm:$0xf0] }
  0x1d   :  { %1344 = vmatpush.bf16.msra.mxu3 %v2131_v12  ;;  %v2059_v21 = vor.u32 %v2789_v19, %v2058_v18  ;;  %v2805_v22 = vld [vmem:[#allocation5 + $0x1e4] sm:$0xf0]  ;;  %v1986_v26 = vld [vmem:[#allocation5 + $0xd0] sm:$0xf]  ;;  %v2771_v27 = vld [vmem:[#allocation5 + $0xd4] sm:$0xf0]  ;;  %v1923_v29 = vor.u32 %v2755_v24, %v1922_v23 }
  0x1e   :  { %v2123_v25 = vor.u32 %v2805_v22, %v2122_v20  ;;  %v2050_v28 = vld [vmem:[#allocation5 + $0x150] sm:$0xf]  ;;  %1306 = vmatpush.bf16.msra.mxu0 %v1931_v16  ;;  %v2787_v30 = vld [vmem:[#allocation5 + $0x154] sm:$0xf0]  ;;  %v1987_v33 = vor.u32 %v2771_v27, %v1986_v26  ;;  %v1914_v35 = vld [vmem:[#allocation5 + $0x40] sm:$0xf] }
  0x1f   :  { %v2114_v31 = vld [vmem:[#allocation5 + $0x1d0] sm:$0xf]  ;;  %v2803_v32 = vld [vmem:[#allocation5 + $0x1d4] sm:$0xf0]  ;;  %1319 = vmatpush.bf16.msra.mxu1 %v1995_v17  ;;  %v2051_v34 = vor.u32 %v2787_v30, %v2050_v28  ;;  %v2753_v36 = vld [vmem:[#allocation5 + $0x44] sm:$0xf0] }
  0x20   :  { %1332 = vmatpush.bf16.msra.mxu2 %v2059_v21  ;;  %v1978_v37 = vld [vmem:[#allocation5 + $0xc0] sm:$0xf]  ;;  %v2115_v38 = vor.u32 %v2803_v32, %v2114_v31  ;;  %v2769_v39 = vld [vmem:[#allocation5 + $0xc4] sm:$0xf0]  ;;  %v1915_v44 = vor.u32 %v2753_v36, %v1914_v35  ;;  %v1906_v47 = vld [vmem:[#allocation5 + $0x30] sm:$0xf] }
  0x21   :  { %1345 = vmatpush.bf16.msra.mxu3 %v2123_v25  ;;  %v2042_v40 = vld [vmem:[#allocation5 + $0x140] sm:$0xf]  ;;  %v2785_v41 = vld [vmem:[#allocation5 + $0x144] sm:$0xf0]  ;;  %v1979_v45 = vor.u32 %v2769_v39, %v1978_v37  ;;  %v2751_v48 = vld [vmem:[#allocation5 + $0x34] sm:$0xf0] }
  0x22   :  { %v2106_v42 = vld [vmem:[#allocation5 + $0x1c0] sm:$0xf]  ;;  %v2801_v43 = vld [vmem:[#allocation5 + $0x1c4] sm:$0xf0]  ;;  %1307 = vmatpush.bf16.msra.mxu0 %v1923_v29  ;;  %v2043_v46 = vor.u32 %v2785_v41, %v2042_v40  ;;  %v1970_v49 = vld [vmem:[#allocation5 + $0xb0] sm:$0xf]  ;;  %v1907_v56 = vor.u32 %v2751_v48, %v1906_v47 }
  0x23   :  { %1320 = vmatpush.bf16.msra.mxu1 %v1987_v33  ;;  %v2107_v50 = vor.u32 %v2801_v43, %v2106_v42  ;;  %v2767_v51 = vld [vmem:[#allocation5 + $0xb4] sm:$0xf0]  ;;  %v2034_v52 = vld [vmem:[#allocation5 + $0x130] sm:$0xf]  ;;  %v1898_v59 = vld [vmem:[#allocation5 + $0x20] sm:$0xf] }
  0x24   :  { %1333 = vmatpush.bf16.msra.mxu2 %v2051_v34  ;;  %v2783_v53 = vld [vmem:[#allocation5 + $0x134] sm:$0xf0]  ;;  %v2098_v54 = vld [vmem:[#allocation5 + $0x1b0] sm:$0xf]  ;;  %v1971_v57 = vor.u32 %v2767_v51, %v1970_v49  ;;  %v2749_v60 = vld [vmem:[#allocation5 + $0x24] sm:$0xf0] }
  0x25   :  { %1346 = vmatpush.bf16.msra.mxu3 %v2115_v38  ;;  %v2799_v55 = vld [vmem:[#allocation5 + $0x1b4] sm:$0xf0]  ;;  %v2035_v58 = vor.u32 %v2783_v53, %v2034_v52  ;;  %v1962_v61 = vld [vmem:[#allocation5 + $0xa0] sm:$0xf]  ;;  %v2765_v63 = vld [vmem:[#allocation5 + $0xa4] sm:$0xf0]  ;;  %v1899_v4 = vor.u32 %v2749_v60, %v1898_v59 }
  0x26   :  { %1308 = vmatpush.bf16.msra.mxu0 %v1915_v44  ;;  %v2099_v62 = vor.u32 %v2799_v55, %v2098_v54  ;;  %v2026_v0 = vld [vmem:[#allocation5 + $0x120] sm:$0xf]  ;;  %v2781_v1 = vld [vmem:[#allocation5 + $0x124] sm:$0xf0]  ;;  %v1963_v5 = vor.u32 %v2765_v63, %v1962_v61  ;;  %v1890_v7 = vld [vmem:[#allocation5 + $0x10] sm:$0xf] }
  0x27   :  { %1321 = vmatpush.bf16.msra.mxu1 %v1979_v45  ;;  %v2090_v2 = vld [vmem:[#allocation5 + $0x1a0] sm:$0xf]  ;;  %v2797_v3 = vld [vmem:[#allocation5 + $0x1a4] sm:$0xf0]  ;;  %v2027_v6 = vor.u32 %v2781_v1, %v2026_v0  ;;  %v2747_v8 = vld [vmem:[#allocation5 + $0x14] sm:$0xf0] }
  0x28   :  { %1334 = vmatpush.bf16.msra.mxu2 %v2043_v46  ;;  %v1954_v9 = vld [vmem:[#allocation5 + $0x90] sm:$0xf]  ;;  %v2091_v10 = vor.u32 %v2797_v3, %v2090_v2  ;;  %v2763_v11 = vld [vmem:[#allocation5 + $0x94] sm:$0xf0]  ;;  %v1891_v16 = vor.u32 %v2747_v8, %v1890_v7  ;;  %v1882_v17 = vld [vmem:[#allocation5] sm:$0xf] }
  0x29   :  { %1347 = vmatpush.bf16.msra.mxu3 %v2107_v50  ;;  %v2018_v12 = vld [vmem:[#allocation5 + $0x110] sm:$0xf]  ;;  %v2779_v13 = vld [vmem:[#allocation5 + $0x114] sm:$0xf0]  ;;  %v2745_v18 = vld [vmem:[#allocation5 + $0x4] sm:$0xf0]  ;;  %v1955_v19 = vor.u32 %v2763_v11, %v1954_v9 }
  0x2a   :  { %1309 = vmatpush.bf16.msra.mxu0 %v1907_v56  ;;  %v2082_v14 = vld [vmem:[#allocation5 + $0x190] sm:$0xf]  ;;  %v2795_v15 = vld [vmem:[#allocation5 + $0x194] sm:$0xf0]  ;;  %v2019_v20 = vor.u32 %v2779_v13, %v2018_v12  ;;  %v1946_v21 = vld [vmem:[#allocation5 + $0x80] sm:$0xf]  ;;  %v1883_v31 = vor.u32 %v2745_v18, %v1882_v17 }
  0x2b   :  { %1322 = vmatpush.bf16.msra.mxu1 %v1971_v57  ;;  %v2761_v22 = vld [vmem:[#allocation5 + $0x84] sm:$0xf0]  ;;  %v2010_v23 = vld [vmem:[#allocation5 + $0x100] sm:$0xf]  ;;  %v2083_v24 = vor.u32 %v2795_v15, %v2082_v14  ;;  %v2194_v28 = vld [vmem:[#allocation5 + $0x270] sm:$0xf] }
  0x2c   :  { %1335 = vmatpush.bf16.msra.mxu2 %v2035_v58  ;;  %v2777_v25 = vld [vmem:[#allocation5 + $0x104] sm:$0xf0]  ;;  %v2074_v26 = vld [vmem:[#allocation5 + $0x180] sm:$0xf]  ;;  %v2823_v29 = vld [vmem:[#allocation5 + $0x274] sm:$0xf0]  ;;  %v1947_v35 = vor.u32 %v2761_v22, %v1946_v21 }
  0x2d   :  { %1348 = vmatpush.bf16.msra.mxu3 %v2099_v62  ;;  %v2793_v27 = vld [vmem:[#allocation5 + $0x184] sm:$0xf0]  ;;  %v2258_v30 = vld [vmem:[#allocation5 + $0x2f0] sm:$0xf]  ;;  %v2839_v32 = vld [vmem:[#allocation5 + $0x2f4] sm:$0xf0]  ;;  %v2011_v36 = vor.u32 %v2777_v25, %v2010_v23  ;;  %v2195_v40 = vor.u32 %v2823_v29, %v2194_v28 }
  0x2e   :  { %1310 = vmatpush.bf16.msra.mxu0 %v1899_v4  ;;  %v2322_v33 = vld [vmem:[#allocation5 + $0x370] sm:$0xf]  ;;  %v2855_v34 = vld [vmem:[#allocation5 + $0x374] sm:$0xf0]  ;;  %v2075_v39 = vor.u32 %v2793_v27, %v2074_v26  ;;  %v2259_v41 = vor.u32 %v2839_v32, %v2258_v30  ;;  %v2186_v43 = vld [vmem:[#allocation5 + $0x260] sm:$0xf] }
  0x2f   :  { %1323 = vmatpush.bf16.msra.mxu1 %v1963_v5  ;;  %v2386_v37 = vld [vmem:[#allocation5 + $0x3f0] sm:$0xf]  ;;  %v2871_v38 = vld [vmem:[#allocation5 + $0x3f4] sm:$0xf0]  ;;  %v2323_v42 = vor.u32 %v2855_v34, %v2322_v33  ;;  %v2821_v44 = vld [vmem:[#allocation5 + $0x264] sm:$0xf0] }
  0x30   :  { %1336 = vmatpush.bf16.msra.mxu2 %v2027_v6  ;;  %v2250_v45 = vld [vmem:[#allocation5 + $0x2e0] sm:$0xf]  ;;  %v2387_v46 = vor.u32 %v2871_v38, %v2386_v37  ;;  %v2837_v47 = vld [vmem:[#allocation5 + $0x2e4] sm:$0xf0]  ;;  %v2187_v52 = vor.u32 %v2821_v44, %v2186_v43  ;;  %v2178_v55 = vld [vmem:[#allocation5 + $0x250] sm:$0xf] }
  0x31   :  { %1349 = vmatpush.bf16.msra.mxu3 %v2091_v10  ;;  %v2314_v48 = vld [vmem:[#allocation5 + $0x360] sm:$0xf]  ;;  %v2853_v49 = vld [vmem:[#allocation5 + $0x364] sm:$0xf0]  ;;  %v2251_v53 = vor.u32 %v2837_v47, %v2250_v45  ;;  %v2819_v56 = vld [vmem:[#allocation5 + $0x254] sm:$0xf0] }
  0x32   :  { %1311 = vmatpush.bf16.msra.mxu0 %v1891_v16  ;;  %v2378_v50 = vld [vmem:[#allocation5 + $0x3e0] sm:$0xf]  ;;  %v2869_v51 = vld [vmem:[#allocation5 + $0x3e4] sm:$0xf0]  ;;  %v2315_v54 = vor.u32 %v2853_v49, %v2314_v48  ;;  %v2242_v57 = vld [vmem:[#allocation5 + $0x2d0] sm:$0xf]  ;;  %v2179_v0 = vor.u32 %v2819_v56, %v2178_v55 }
  0x33   :  { %1324 = vmatpush.bf16.msra.mxu1 %v1955_v19  ;;  %v2379_v58 = vor.u32 %v2869_v51, %v2378_v50  ;;  %v2835_v59 = vld [vmem:[#allocation5 + $0x2d4] sm:$0xf0]  ;;  %v2306_v60 = vld [vmem:[#allocation5 + $0x350] sm:$0xf]  ;;  %v2170_v1 = vld [vmem:[#allocation5 + $0x240] sm:$0xf] }
  0x34   :  { %1337 = vmatpush.bf16.msra.mxu2 %v2019_v20  ;;  %v2851_v61 = vld [vmem:[#allocation5 + $0x354] sm:$0xf0]  ;;  %v2370_v62 = vld [vmem:[#allocation5 + $0x3d0] sm:$0xf]  ;;  %v101_v2 = vld [vmem:[#allocation2] sm:$0xff]  ;;  %v2243_v3 = vor.u32 %v2835_v59, %v2242_v57  ;;  %s3133_s29 = smov [#allocation11]  }
  0x35   :  { %1350 = vmatpush.bf16.msra.mxu3 %v2083_v24  ;;  %v2867_v63 = vld [vmem:[#allocation5 + $0x3d4] sm:$0xf0]  ;;  %v2307_v4 = vor.u32 %v2851_v61, %v2306_v60  ;;  %v2817_v5 = vld [vmem:[#allocation5 + $0x244] sm:$0xf0]  ;;  %v2234_v6 = vld [vmem:[#allocation5 + $0x2c0] sm:$0xf] }
  0x36   :  { %1312 = vmatpush.bf16.msra.mxu0 %v1883_v31  ;;  %107 = vst [vmem:[#allocation1] ss:$4 sm:$0xff] %v101_v2  ;;  %v2371_v7 = vor.u32 %v2867_v63, %v2370_v62  ;;  %v2833_v8 = vld [vmem:[#allocation5 + $0x2c4] sm:$0xf0]  ;;  %v2298_v9 = vld [vmem:[#allocation5 + $0x340] sm:$0xf]  ;;  %v2171_v13 = vor.u32 %v2817_v5, %v2170_v1 }
  0x37   :  { %1325 = vmatpush.bf16.msra.mxu1 %v1947_v35  ;;  %v2849_v10 = vld [vmem:[#allocation5 + $0x344] sm:$0xf0]  ;;  %v2362_v11 = vld [vmem:[#allocation5 + $0x3c0] sm:$0xf]  ;;  %v2162_v14 = vld [vmem:[#allocation5 + $0x230] sm:$0xf]  ;;  %v2235_v16 = vor.u32 %v2833_v8, %v2234_v6 }
  0x38   :  { %1338 = vmatpush.bf16.msra.mxu2 %v2011_v36  ;;  %v2865_v12 = vld [vmem:[#allocation5 + $0x3c4] sm:$0xf0]  ;;  %v2815_v15 = vld [vmem:[#allocation5 + $0x234] sm:$0xf0]  ;;  %v2299_v17 = vor.u32 %v2849_v10, %v2298_v9  ;;  %v2226_v18 = vld [vmem:[#allocation5 + $0x2b0] sm:$0xf] }
  0x39   :  { %1351 = vmatpush.bf16.msra.mxu3 %v2075_v39  ;;  %v2831_v19 = vld [vmem:[#allocation5 + $0x2b4] sm:$0xf0]  ;;  %v2290_v20 = vld [vmem:[#allocation5 + $0x330] sm:$0xf]  ;;  %v2363_v21 = vor.u32 %v2865_v12, %v2362_v11  ;;  %v2154_v25 = vld [vmem:[#allocation5 + $0x220] sm:$0xf]  ;;  %v2163_v28 = vor.u32 %v2815_v15, %v2162_v14 }
  0x3a   :  { %1357 = vmatpush.bf16.msrb.mxu0 %v2195_v40  ;;  %v2847_v22 = vld [vmem:[#allocation5 + $0x334] sm:$0xf0]  ;;  %v2354_v23 = vld [vmem:[#allocation5 + $0x3b0] sm:$0xf]  ;;  %v2813_v26 = vld [vmem:[#allocation5 + $0x224] sm:$0xf0]  ;;  %v2227_v29 = vor.u32 %v2831_v19, %v2226_v18 }
  0x3b   :  { %1370 = vmatpush.bf16.msrb.mxu1 %v2259_v41  ;;  %v2863_v24 = vld [vmem:[#allocation5 + $0x3b4] sm:$0xf0]  ;;  %v2218_v30 = vld [vmem:[#allocation5 + $0x2a0] sm:$0xf]  ;;  %v2829_v31 = vld [vmem:[#allocation5 + $0x2a4] sm:$0xf0]  ;;  %v2291_v34 = vor.u32 %v2847_v22, %v2290_v20 }
  0x3c   :  { %1383 = vmatpush.bf16.msrb.mxu2 %v2323_v42  ;;  %v103_v27 = vld [vmem:[#allocation2 + $0x10] sm:$0xff]  ;;  %v2355_v39 = vor.u32 %v2863_v24, %v2354_v23  ;;  %v2282_v40 = vld [vmem:[#allocation5 + $0x320] sm:$0xf]  ;;  %v2845_v41 = vld [vmem:[#allocation5 + $0x324] sm:$0xf0]  ;;  %v2219_v48 = vor.u32 %v2829_v31, %v2218_v30  ;;  %s1866_s30 = sshll.u32 %s3133_s29, 4  ;;  %s1867_s30 = int_to_ptr.vmem [resolvable:$true] %s1866_s30 }
  0x3d   :  { %1396 = vmatpush.bf16.msrb.mxu3 %v2387_v46  ;;  %v112_v32 = vld.sshfl [vmem:[#allocation1 + $0x10] sm:$0xff pattern:$0x73625140]  ;;  %v110_v33 = vld.sshfl [vmem:[#allocation1] sm:$0xff pattern:$0x73625140]  ;;  %v2155_v46 = vor.u32 %v2813_v26, %v2154_v25  ;;  %v2283_v49 = vor.u32 %v2845_v41, %v2282_v40 }
  0x3e   :  { %1358 = vmatpush.bf16.msrb.mxu0 %v2187_v52  ;;  %v3189_v35 = vpack.c.bf16 %v112_v32, %v112_v32  ;;  %v3191_v36 = vpack.c.bf16 %v110_v33, %v110_v33  ;;  %v113_v37 = vld.sshfl [vmem:[#allocation1 + $0x18] sm:$0xff pattern:$0x73625140]  ;;  %v111_v38 = vld.sshfl [vmem:[#allocation1 + $0x8] sm:$0xff pattern:$0x73625140] }
  0x3f   :  { %1371 = vmatpush.bf16.msrb.mxu1 %v2251_v53  ;;  %v3193_v42 = vpack.c.bf16 %v113_v37, %v113_v37  ;;  %118 = vst [vmem:[#allocation1] ss:$4 sm:$0xff] %v103_v27  ;;  %v3195_v43 = vpack.c.bf16 %v111_v38, %v111_v38  ;;  %v2346_v44 = vld [vmem:[#allocation5 + $0x3a0] sm:$0xf]  ;;  %v2861_v45 = vld [vmem:[#allocation5 + $0x3a4] sm:$0xf0] }
  0x40   :  { %1384 = vmatpush.bf16.msrb.mxu2 %v2315_v54  ;;  %1313 = vmatmul.bf16.vlgmr.msra.gmra.mxu0 %v3191_v36  ;;  %v2146_v47 = vld [vmem:[#allocation5 + $0x210] sm:$0xf]  ;;  %v2811_v50 = vld [vmem:[#allocation5 + $0x214] sm:$0xf0]  ;;  %v2347_v53 = vor.u32 %v2861_v45, %v2346_v44  ;;  %v2138_v60 = vld [vmem:[#allocation5 + $0x200] sm:$0xf] }
  0x41   :  { %1397 = vmatpush.bf16.msrb.mxu3 %v2379_v58  ;;  %1339 = vmatmul.bf16.vlgmr.msra.gmra.mxu2 %v3189_v35  ;;  %v2210_v51 = vld [vmem:[#allocation5 + $0x290] sm:$0xf]  ;;  %v2827_v52 = vld [vmem:[#allocation5 + $0x294] sm:$0xf0]  ;;  %v2147_v59 = vor.u32 %v2811_v50, %v2146_v47  ;;  %v2809_v61 = vld [vmem:[#allocation5 + $0x204] sm:$0xf0] }
  0x42   :  { %1359 = vmatpush.bf16.msrb.mxu0 %v2179_v0  ;;  %1352 = vmatmul.bf16.vlgmr.msra.gmra.mxu3 %v3193_v42  ;;  %v2274_v54 = vld [vmem:[#allocation5 + $0x310] sm:$0xf]  ;;  %v2843_v55 = vld [vmem:[#allocation5 + $0x314] sm:$0xf0]  ;;  %v2202_v62 = vld [vmem:[#allocation5 + $0x280] sm:$0xf]  ;;  %v2211_v63 = vor.u32 %v2827_v52, %v2210_v51  ;;  %v2139_v11 = vor.u32 %v2809_v61, %v2138_v60 }
  0x43   :  { %1372 = vmatpush.bf16.msrb.mxu1 %v2243_v3  ;;  %v102_v56 = vld [vmem:[#allocation2 + $0x8] sm:$0xff]  ;;  %v2859_v58 = vld [vmem:[#allocation5 + $0x394] sm:$0xf0]  ;;  %v2275_v0 = vor.u32 %v2843_v55, %v2274_v54  ;;  %v2825_v1 = vld [vmem:[#allocation5 + $0x284] sm:$0xf0]  ;;  %s1868_s10 = sshll.u32 %s3257_s7, 4  ;;  %s1869_s10 = int_to_ptr.hbm [resolvable:$true] %s1868_s10 }
  0x44   :  { %1385 = vmatpush.bf16.msrb.mxu2 %v2307_v4  ;;  %1326 = vmatmul.bf16.vlgmr.msra.gmra.mxu1 %v3195_v43  ;;  %v2338_v57 = vld [vmem:[#allocation5 + $0x390] sm:$0xf]  ;;  %109 = vst [vmem:[#allocation1 + $0x20] ss:$4 sm:$0xff] %v102_v56  ;;  %v2266_v2 = vld [vmem:[#allocation5 + $0x300] sm:$0xf]  ;;  %v2203_v15 = vor.u32 %v2825_v1, %v2202_v62 }
  0x45   :  { %1398 = vmatpush.bf16.msrb.mxu3 %v2371_v7  ;;  %v2841_v3 = vld [vmem:[#allocation5 + $0x304] sm:$0xf0]  ;;  %v2339_v4 = vor.u32 %v2859_v58, %v2338_v57  ;;  %v2330_v5 = vld [vmem:[#allocation5 + $0x380] sm:$0xf]  ;;  %v2450_v7 = vld [vmem:[#allocation5 + $0x470] sm:$0xf] }
  0x46   :  { %1360 = vmatpush.bf16.msrb.mxu0 %v2171_v13  ;;  %v2857_v6 = vld [vmem:[#allocation5 + $0x384] sm:$0xf0]  ;;  %v2887_v8 = vld [vmem:[#allocation5 + $0x474] sm:$0xf0]  ;;  %v2514_v9 = vld [vmem:[#allocation5 + $0x4f0] sm:$0xf] }
  0x47   :  { %1373 = vmatpush.bf16.msrb.mxu1 %v2235_v16  ;;  %v2903_v10 = vld [vmem:[#allocation5 + $0x4f4] sm:$0xf0]  ;;  %v2578_v12 = vld [vmem:[#allocation5 + $0x570] sm:$0xf]  ;;  %v2267_v16 = vor.u32 %v2841_v3, %v2266_v2  ;;  %v2442_v18 = vld [vmem:[#allocation5 + $0x460] sm:$0xf]  ;;  %v2331_v20 = vor.u32 %v2857_v6, %v2330_v5 }
  0x48   :  { %1386 = vmatpush.bf16.msrb.mxu2 %v2299_v17  ;;  %v2919_v13 = vld [vmem:[#allocation5 + $0x574] sm:$0xf0]  ;;  %v2642_v14 = vld [vmem:[#allocation5 + $0x5f0] sm:$0xf]  ;;  %v2885_v19 = vld [vmem:[#allocation5 + $0x464] sm:$0xf0]  ;;  %v2515_v25 = vor.u32 %v2903_v10, %v2514_v9 }
  0x49   :  { %1399 = vmatpush.bf16.msrb.mxu3 %v2363_v21  ;;  %v2935_v17 = vld [vmem:[#allocation5 + $0x5f4] sm:$0xf0]  ;;  %v2451_v21 = vor.u32 %v2887_v8, %v2450_v7  ;;  %v2506_v22 = vld [vmem:[#allocation5 + $0x4e0] sm:$0xf]  ;;  %v2579_v26 = vor.u32 %v2919_v13, %v2578_v12  ;;  %v2901_v30 = vld [vmem:[#allocation5 + $0x4e4] sm:$0xf0]  ;;  %v2443_v40 = vor.u32 %v2885_v19, %v2442_v18 }
  0x4a   :  { %1361 = vmatpush.bf16.msrb.mxu0 %v2163_v28  ;;  %v2570_v31 = vld [vmem:[#allocation5 + $0x560] sm:$0xf]  ;;  %v2917_v32 = vld [vmem:[#allocation5 + $0x564] sm:$0xf0]  ;;  %v2507_v44 = vor.u32 %v2901_v30, %v2506_v22  ;;  %v2883_v47 = vld [vmem:[#allocation5 + $0x454] sm:$0xf0] }
  0x4b   :  { %1374 = vmatpush.bf16.msrb.mxu1 %v2227_v29  ;;  %v116_v23 = vld.sshfl [vmem:[#allocation1 + $0x30] sm:$0xff pattern:$0x73625140]  ;;  %v114_v24 = vld.sshfl [vmem:[#allocation1 + $0x20] sm:$0xff pattern:$0x73625140]  ;;  %v2643_v29 = vor.u32 %v2935_v17, %v2642_v14  ;;  %v2571_v45 = vor.u32 %v2917_v32, %v2570_v31 }
  0x4c   :  { %1387 = vmatpush.bf16.msrb.mxu2 %v2291_v34  ;;  %v117_v27 = vld.sshfl [vmem:[#allocation1 + $0x38] sm:$0xff pattern:$0x73625140]  ;;  %v115_v28 = vld.sshfl [vmem:[#allocation1 + $0x28] sm:$0xff pattern:$0x73625140]  ;;  %v3201_v33 = vpack.c.bf16 %v116_v23, %v116_v23  ;;  %v3203_v38 = vpack.c.bf16 %v114_v24, %v114_v24 }
  0x4d   :  { %1400 = vmatpush.bf16.msrb.mxu3 %v2355_v39  ;;  %v2634_v34 = vld [vmem:[#allocation5 + $0x5e0] sm:$0xf]  ;;  %v2933_v37 = vld [vmem:[#allocation5 + $0x5e4] sm:$0xf0]  ;;  %v3205_v39 = vpack.c.bf16 %v117_v27, %v117_v27  ;;  %v3207_v41 = vpack.c.bf16 %v115_v28, %v115_v28  ;;  %v2899_v50 = vld [vmem:[#allocation5 + $0x4d4] sm:$0xf0] }
  0x4e   :  { %1362 = vmatpush.bf16.msrb.mxu0 %v2155_v46  ;;  %v2434_v46 = vld [vmem:[#allocation5 + $0x450] sm:$0xf]  ;;  %v2915_v52 = vld [vmem:[#allocation5 + $0x554] sm:$0xf0]  ;;  %v2426_v58 = vld [vmem:[#allocation5 + $0x440] sm:$0xf] }
  0x4f   :  { %1375 = vmatpush.bf16.msrb.mxu1 %v2219_v48  ;;  %v2498_v48 = vld [vmem:[#allocation5 + $0x4d0] sm:$0xf]  ;;  %v2931_v54 = vld [vmem:[#allocation5 + $0x5d4] sm:$0xf0]  ;;  %v2435_v55 = vor.u32 %v2883_v47, %v2434_v46  ;;  %v2490_v60 = vld [vmem:[#allocation5 + $0x4c0] sm:$0xf] }
  0x50   :  { %1388 = vmatpush.bf16.msrb.mxu2 %v2283_v49  ;;  %v2635_v49 = vor.u32 %v2933_v37, %v2634_v34  ;;  %v2562_v51 = vld [vmem:[#allocation5 + $0x550] sm:$0xf]  ;;  %v2499_v56 = vor.u32 %v2899_v50, %v2498_v48  ;;  %v2897_v62 = vld [vmem:[#allocation5 + $0x4c4] sm:$0xf0]  ;;  %v2618_v1 = vld [vmem:[#allocation5 + $0x5c0] sm:$0xf] }
  0x51   :  { %1401 = vmatpush.bf16.msrb.mxu3 %v2347_v53  ;;  %v2626_v53 = vld [vmem:[#allocation5 + $0x5d0] sm:$0xf]  ;;  %v2563_v57 = vor.u32 %v2915_v52, %v2562_v51  ;;  %v2929_v2 = vld [vmem:[#allocation5 + $0x5c4] sm:$0xf0]  ;;  %v2879_v7 = vld [vmem:[#allocation5 + $0x434] sm:$0xf0] }
  0x52   :  { %1363 = vmatpush.bf16.msrb.mxu0 %v2147_v59  ;;  %v2881_v59 = vld [vmem:[#allocation5 + $0x444] sm:$0xf0]  ;;  %v2627_v61 = vor.u32 %v2931_v54, %v2626_v53  ;;  %v2418_v6 = vld [vmem:[#allocation5 + $0x430] sm:$0xf]  ;;  %v2619_v9 = vor.u32 %v2929_v2, %v2618_v1  ;;  %v2895_v10 = vld [vmem:[#allocation5 + $0x4b4] sm:$0xf0] }
  0x53   :  { %1376 = vmatpush.bf16.msrb.mxu1 %v2211_v63  ;;  %v2554_v63 = vld [vmem:[#allocation5 + $0x540] sm:$0xf]  ;;  %v2427_v3 = vor.u32 %v2881_v59, %v2426_v58  ;;  %v2482_v8 = vld [vmem:[#allocation5 + $0x4b0] sm:$0xf]  ;;  %v2911_v12 = vld [vmem:[#allocation5 + $0x534] sm:$0xf0] }
  0x54   :  { %1389 = vmatpush.bf16.msrb.mxu2 %v2275_v0  ;;  %v2913_v0 = vld [vmem:[#allocation5 + $0x544] sm:$0xf0]  ;;  %v2610_v13 = vld [vmem:[#allocation5 + $0x5b0] sm:$0xf]  ;;  %v2927_v14 = vld [vmem:[#allocation5 + $0x5b4] sm:$0xf0] }
  0x55   :  { %1402 = vmatpush.bf16.msrb.mxu3 %v2339_v4  ;;  %v2491_v4 = vor.u32 %v2897_v62, %v2490_v60  ;;  %v2555_v5 = vor.u32 %v2913_v0, %v2554_v63  ;;  %v2410_v18 = vld [vmem:[#allocation5 + $0x420] sm:$0xf]  ;;  %v2877_v19 = vld [vmem:[#allocation5 + $0x424] sm:$0xf0]  ;;  %v2402_v30 = vld [vmem:[#allocation5 + $0x410] sm:$0xf] }
  0x56   :  { %1364 = vmatpush.bf16.msrb.mxu0 %v2139_v11  ;;  %v2546_v11 = vld [vmem:[#allocation5 + $0x530] sm:$0xf]  ;;  %v2893_v22 = vld [vmem:[#allocation5 + $0x4a4] sm:$0xf0]  ;;  %v2538_v23 = vld [vmem:[#allocation5 + $0x520] sm:$0xf]  ;;  %v2411_v27 = vor.u32 %v2877_v19, %v2410_v18 }
  0x57   :  { %1377 = vmatpush.bf16.msrb.mxu1 %v2203_v15  ;;  %v2419_v15 = vor.u32 %v2879_v7, %v2418_v6  ;;  %v2547_v17 = vor.u32 %v2911_v12, %v2546_v11  ;;  %v2909_v24 = vld [vmem:[#allocation5 + $0x524] sm:$0xf0]  ;;  %v2875_v31 = vld [vmem:[#allocation5 + $0x414] sm:$0xf0]  ;;  %v2466_v32 = vld [vmem:[#allocation5 + $0x490] sm:$0xf] }
  0x58   :  { %1390 = vmatpush.bf16.msrb.mxu2 %v2267_v16  ;;  %v2483_v16 = vor.u32 %v2895_v10, %v2482_v8  ;;  %v2891_v37 = vld [vmem:[#allocation5 + $0x494] sm:$0xf0]  ;;  %v2394_v47 = vld [vmem:[#allocation5 + $0x400] sm:$0xf]  ;;  %v2403_v48 = vor.u32 %v2875_v31, %v2402_v30  ;;  %v2889_v51 = vld [vmem:[#allocation5 + $0x484] sm:$0xf0] }
  0x59   :  { %1403 = vmatpush.bf16.msrb.mxu3 %v2331_v20  ;;  %1365 = vmatmul.bf16.vlgmr.msrb.gmra.mxu0 %v3203_v38  ;;  %v2474_v20 = vld [vmem:[#allocation5 + $0x4a0] sm:$0xf]  ;;  %v2923_v46 = vld [vmem:[#allocation5 + $0x594] sm:$0xf0]  ;;  %v2467_v52 = vor.u32 %v2891_v37, %v2466_v32  ;;  %v2921_v58 = vld [vmem:[#allocation5 + $0x584] sm:$0xf0] }
  0x5a   :  { %1409 = vmatpush.bf16.msra.mxu0 %v2451_v21  ;;  %1378 = vmatmul.bf16.vlgmr.msrb.gmra.mxu1 %v3207_v41  ;;  %v2611_v21 = vor.u32 %v2927_v14, %v2610_v13  ;;  %v2475_v28 = vor.u32 %v2893_v22, %v2474_v20  ;;  %v2458_v50 = vld [vmem:[#allocation5 + $0x480] sm:$0xf]  ;;  %v2758_v59 = vld [vmem:[#allocation5 + $0x74] sm:$0xf]  ;;  %v1940_v60 = vld [vmem:[#allocation5 + $0x78] sm:$0xf0] }
  0x5b   :  { %1422 = vmatpush.bf16.msra.mxu1 %v2515_v25  ;;  %1391 = vmatmul.bf16.vlgmr.msrb.gmra.mxu2 %v3201_v33  ;;  %v2602_v25 = vld [vmem:[#allocation5 + $0x5a0] sm:$0xf]  ;;  %v2004_v62 = vld [vmem:[#allocation5 + $0xf8] sm:$0xf0]  ;;  %v2790_v63 = vld [vmem:[#allocation5 + $0x174] sm:$0xf] }
  0x5c   :  { %1435 = vmatpush.bf16.msra.mxu2 %v2579_v26  ;;  %1404 = vmatmul.bf16.vlgmr.msrb.gmra.mxu3 %v3205_v39  ;;  %v2925_v26 = vld [vmem:[#allocation5 + $0x5a4] sm:$0xf0]  ;;  %v2522_v54 = vld [vmem:[#allocation5 + $0x500] sm:$0xf]  ;;  %v2068_v1 = vld [vmem:[#allocation5 + $0x178] sm:$0xf0] }
  0x5d   :  { %1448 = vmatpush.bf16.msra.mxu3 %v2643_v29  ;;  %v2539_v29 = vor.u32 %v2909_v24, %v2538_v23  ;;  %v2603_v34 = vor.u32 %v2925_v26, %v2602_v25  ;;  %v2806_v2 = vld [vmem:[#allocation5 + $0x1f4] sm:$0xf]  ;;  %v119_v6 = vld.sshfl [vmem:[#allocation1] sm:$0xff pattern:$0x73625140]  ;;  %v2071_v13 = vor.u32 %v2790_v63, %v2068_v1 }
  0x5e   :  { %1410 = vmatpush.bf16.msra.mxu0 %v2443_v40  ;;  %v2530_v40 = vld [vmem:[#allocation5 + $0x510] sm:$0xf]  ;;  %v120_v10 = vld.sshfl [vmem:[#allocation1 + $0x8] sm:$0xff pattern:$0x73625140]  ;;  %v3213_v18 = vpack.c.bf16 %v119_v6, %v119_v6 }
  0x5f   :  { %1423 = vmatpush.bf16.msra.mxu1 %v2507_v44  ;;  %v2907_v44 = vld [vmem:[#allocation5 + $0x514] sm:$0xf0]  ;;  %v121_v7 = vld.sshfl [vmem:[#allocation1 + $0x10] sm:$0xff pattern:$0x73625140]  ;;  %v3217_v23 = vpack.c.bf16 %v120_v10, %v120_v10 }
  0x60   :  { %1436 = vmatpush.bf16.msra.mxu2 %v2571_v45  ;;  %v2594_v45 = vld [vmem:[#allocation5 + $0x590] sm:$0xf]  ;;  %v2531_v53 = vor.u32 %v2907_v44, %v2530_v40  ;;  %v122_v11 = vld.sshfl [vmem:[#allocation1 + $0x18] sm:$0xff pattern:$0x73625140]  ;;  %v3215_v22 = vpack.c.bf16 %v121_v7, %v121_v7 }
  0x61   :  { %1449 = vmatpush.bf16.msra.mxu3 %v2635_v49  ;;  %v2873_v49 = vld [vmem:[#allocation5 + $0x404] sm:$0xf0]  ;;  %v2756_v14 = vld [vmem:[#allocation5 + $0x64] sm:$0xf]  ;;  %v1996_v19 = vld [vmem:[#allocation5 + $0xe8] sm:$0xf0]  ;;  %v3219_v26 = vpack.c.bf16 %v122_v11, %v122_v11 }
  0x62   :  { %1411 = vmatpush.bf16.msra.mxu0 %v2435_v55  ;;  %v2905_v55 = vld [vmem:[#allocation5 + $0x504] sm:$0xf0]  ;;  %v2395_v0 = vor.u32 %v2873_v49, %v2394_v47  ;;  %v2788_v20 = vld [vmem:[#allocation5 + $0x164] sm:$0xf]  ;;  %v2124_v25 = vld [vmem:[#allocation5 + $0x1e8] sm:$0xf0] }
  0x63   :  { %1424 = vmatpush.bf16.msra.mxu1 %v2499_v56  ;;  %v2586_v56 = vld [vmem:[#allocation5 + $0x580] sm:$0xf]  ;;  %v2804_v24 = vld [vmem:[#allocation5 + $0x1e4] sm:$0xf]  ;;  %v2754_v30 = vld [vmem:[#allocation5 + $0x54] sm:$0xf] }
  0x64   :  { %1437 = vmatpush.bf16.msra.mxu2 %v2563_v57  ;;  %v2595_v57 = vor.u32 %v2923_v46, %v2594_v45  ;;  %v2587_v8 = vor.u32 %v2921_v58, %v2586_v56  ;;  %v1924_v31 = vld [vmem:[#allocation5 + $0x58] sm:$0xf0]  ;;  %v2770_v32 = vld [vmem:[#allocation5 + $0xd4] sm:$0xf]  ;;  %v2044_v56 = vld [vmem:[#allocation5 + $0x148] sm:$0xf0] }
  0x65   :  { %1450 = vmatpush.bf16.msra.mxu3 %v2627_v61  ;;  %v2774_v61 = vld [vmem:[#allocation5 + $0xf4] sm:$0xf]  ;;  %v1988_v37 = vld [vmem:[#allocation5 + $0xd8] sm:$0xf0]  ;;  %v1927_v47 = vor.u32 %v2754_v30, %v1924_v31  ;;  %v2108_v58 = vld [vmem:[#allocation5 + $0x1c8] sm:$0xf0] }
  0x66   :  { %1412 = vmatpush.bf16.msra.mxu0 %v2427_v3  ;;  %v2132_v3 = vld [vmem:[#allocation5 + $0x1f8] sm:$0xf0]  ;;  %v2007_v12 = vor.u32 %v2774_v61, %v2004_v62  ;;  %v2786_v40 = vld [vmem:[#allocation5 + $0x154] sm:$0xf]  ;;  %v2748_v10 = vld [vmem:[#allocation5 + $0x24] sm:$0xf] }
  0x67   :  { %1425 = vmatpush.bf16.msra.mxu1 %v2491_v4  ;;  %v2459_v4 = vor.u32 %v2889_v51, %v2458_v50  ;;  %v2052_v44 = vld [vmem:[#allocation5 + $0x158] sm:$0xf0]  ;;  %v2802_v45 = vld [vmem:[#allocation5 + $0x1d4] sm:$0xf]  ;;  %v2752_v50 = vld [vmem:[#allocation5 + $0x44] sm:$0xf] }
  0x68   :  { %1438 = vmatpush.bf16.msra.mxu2 %v2555_v5  ;;  %v2523_v5 = vor.u32 %v2905_v55, %v2522_v54  ;;  %v2116_v46 = vld [vmem:[#allocation5 + $0x1d8] sm:$0xf0]  ;;  %v2055_v49 = vor.u32 %v2786_v40, %v2052_v44  ;;  %v1916_v51 = vld [vmem:[#allocation5 + $0x48] sm:$0xf0]  ;;  %v2784_v55 = vld [vmem:[#allocation5 + $0x144] sm:$0xf] }
  0x69   :  { %1451 = vmatpush.bf16.msra.mxu3 %v2619_v9  ;;  %v1943_v9 = vor.u32 %v2758_v59, %v1940_v60  ;;  %v1980_v54 = vld [vmem:[#allocation5 + $0xc8] sm:$0xf0]  ;;  %v1919_v59 = vor.u32 %v2752_v50, %v1916_v51  ;;  %v2750_v60 = vld [vmem:[#allocation5 + $0x34] sm:$0xf]  ;;  %v2047_v62 = vor.u32 %v2784_v55, %v2044_v56  ;;  %v1908_v63 = vld [vmem:[#allocation5 + $0x38] sm:$0xf0] }
  0x6a   :  { %1413 = vmatpush.bf16.msra.mxu0 %v2419_v15  ;;  %v1932_v15 = vld [vmem:[#allocation5 + $0x68] sm:$0xf0]  ;;  %v1972_v1 = vld [vmem:[#allocation5 + $0xb8] sm:$0xf0]  ;;  %v1911_v7 = vor.u32 %v2750_v60, %v1908_v63  ;;  %v2778_v31 = vld [vmem:[#allocation5 + $0x114] sm:$0xf] }
  0x6b   :  { %1426 = vmatpush.bf16.msra.mxu1 %v2483_v16  ;;  %v2772_v16 = vld [vmem:[#allocation5 + $0xe4] sm:$0xf]  ;;  %v2100_v6 = vld [vmem:[#allocation5 + $0x1b8] sm:$0xf0]  ;;  %v1900_v11 = vld [vmem:[#allocation5 + $0x28] sm:$0xf0] }
  0x6c   :  { %1439 = vmatpush.bf16.msra.mxu2 %v2547_v17  ;;  %v2135_v17 = vor.u32 %v2806_v2, %v2132_v3  ;;  %v2782_v3 = vld [vmem:[#allocation5 + $0x134] sm:$0xf]  ;;  %v1956_v30 = vld [vmem:[#allocation5 + $0x98] sm:$0xf0]  ;;  %v2744_v44 = vld [vmem:[#allocation5 + $0x4] sm:$0xf] }
  0x6d   :  { %1452 = vmatpush.bf16.msra.mxu3 %v2611_v21  ;;  %v2060_v21 = vld [vmem:[#allocation5 + $0x168] sm:$0xf0]  ;;  %v2776_v50 = vld [vmem:[#allocation5 + $0x104] sm:$0xf]  ;;  %v2822_v55 = vld [vmem:[#allocation5 + $0x274] sm:$0xf] }
  0x6e   :  { %1414 = vmatpush.bf16.msra.mxu0 %v2411_v27  ;;  %v1935_v27 = vor.u32 %v2756_v14, %v1932_v15  ;;  %v1964_v14 = vld [vmem:[#allocation5 + $0xa8] sm:$0xf0]  ;;  %v2780_v15 = vld [vmem:[#allocation5 + $0x124] sm:$0xf]  ;;  %v2196_v56 = vld [vmem:[#allocation5 + $0x278] sm:$0xf0] }
  0x6f   :  { %1427 = vmatpush.bf16.msra.mxu1 %v2475_v28  ;;  %v1999_v28 = vor.u32 %v2772_v16, %v1996_v19  ;;  %v2028_v16 = vld [vmem:[#allocation5 + $0x128] sm:$0xf0]  ;;  %v2854_v60 = vld [vmem:[#allocation5 + $0x374] sm:$0xf] }
  0x70   :  { %1440 = vmatpush.bf16.msra.mxu2 %v2539_v29  ;;  %v2063_v29 = vor.u32 %v2788_v20, %v2060_v21  ;;  %v2092_v19 = vld [vmem:[#allocation5 + $0x1a8] sm:$0xf0]  ;;  %v1903_v20 = vor.u32 %v2748_v10, %v1900_v11  ;;  %v2852_v11 = vld [vmem:[#allocation5 + $0x364] sm:$0xf] }
  0x71   :  { %1453 = vmatpush.bf16.msra.mxu3 %v2603_v34  ;;  %v2127_v34 = vor.u32 %v2804_v24, %v2124_v25  ;;  %v2031_v24 = vor.u32 %v2780_v15, %v2028_v16  ;;  %v2746_v25 = vld [vmem:[#allocation5 + $0x14] sm:$0xf]  ;;  %v2252_v10 = vld [vmem:[#allocation5 + $0x2e8] sm:$0xf0] }
  0x72   :  { %1415 = vmatpush.bf16.msra.mxu0 %v2403_v48  ;;  %v1991_v48 = vor.u32 %v2770_v32, %v1988_v37  ;;  %v2020_v32 = vld [vmem:[#allocation5 + $0x118] sm:$0xf0] }
  0x73   :  { %1428 = vmatpush.bf16.msra.mxu1 %v2467_v52  ;;  %v2768_v52 = vld [vmem:[#allocation5 + $0xc4] sm:$0xf]  ;;  %v2084_v37 = vld [vmem:[#allocation5 + $0x198] sm:$0xf0] }
  0x74   :  { %1441 = vmatpush.bf16.msra.mxu2 %v2531_v53  ;;  %v2119_v53 = vor.u32 %v2802_v45, %v2116_v46  ;;  %v1983_v61 = vor.u32 %v2768_v52, %v1980_v54  ;;  %v1884_v45 = vld [vmem:[#allocation5 + $0x8] sm:$0xf0] }
  0x75   :  { %1454 = vmatpush.bf16.msra.mxu3 %v2595_v57  ;;  %v2800_v57 = vld [vmem:[#allocation5 + $0x1c4] sm:$0xf]  ;;  %v2012_v52 = vld [vmem:[#allocation5 + $0x108] sm:$0xf0] }
  0x76   :  { %1416 = vmatpush.bf16.msra.mxu0 %v2395_v0  ;;  %v2766_v0 = vld [vmem:[#allocation5 + $0xb4] sm:$0xf]  ;;  %v2111_v2 = vor.u32 %v2800_v57, %v2108_v58  ;;  %v2076_v54 = vld [vmem:[#allocation5 + $0x188] sm:$0xf0]  ;;  %v1887_v58 = vor.u32 %v2744_v44, %v1884_v45  ;;  %v2015_v63 = vor.u32 %v2776_v50, %v2012_v52  ;;  %v2832_v44 = vld [vmem:[#allocation5 + $0x2c4] sm:$0xf] }
  0x77   :  { %1429 = vmatpush.bf16.msra.mxu1 %v2459_v4  ;;  %v2036_v4 = vld [vmem:[#allocation5 + $0x138] sm:$0xf0]  ;;  %v2838_v57 = vld [vmem:[#allocation5 + $0x2f4] sm:$0xf] }
  0x78   :  { %1442 = vmatpush.bf16.msra.mxu2 %v2523_v5  ;;  %v2798_v5 = vld [vmem:[#allocation5 + $0x1b4] sm:$0xf] }
  0x79   :  { %1455 = vmatpush.bf16.msra.mxu3 %v2587_v8  ;;  %1417 = vmatmul.bf16.vlgmr.msra.gmra.mxu0 %v3213_v18  ;;  %v1975_v8 = vor.u32 %v2766_v0, %v1972_v1  ;;  %v2870_v0 = vld [vmem:[#allocation5 + $0x3f4] sm:$0xf]  ;;  %v2388_v1 = vld [vmem:[#allocation5 + $0x3f8] sm:$0xf0] }
  0x7a   :  { %1461 = vmatpush.bf16.msrb.mxu0 %v1943_v9  ;;  %1430 = vmatmul.bf16.vlgmr.msra.gmra.mxu1 %v3217_v23  ;;  %v2039_v9 = vor.u32 %v2782_v3, %v2036_v4  ;;  %v2199_v3 = vor.u32 %v2822_v55, %v2196_v56  ;;  %v2814_v50 = vld [vmem:[#allocation5 + $0x234] sm:$0xf]  ;;  %v2292_v56 = vld [vmem:[#allocation5 + $0x338] sm:$0xf0] }
  0x7b   :  { %1474 = vmatpush.bf16.msrb.mxu1 %v2007_v12  ;;  %1443 = vmatmul.bf16.vlgmr.msra.gmra.mxu2 %v3215_v22  ;;  %v2764_v12 = vld [vmem:[#allocation5 + $0xa4] sm:$0xf]  ;;  %v2830_v52 = vld [vmem:[#allocation5 + $0x2b4] sm:$0xf] }
  0x7c   :  { %1487 = vmatpush.bf16.msrb.mxu2 %v2071_v13  ;;  %1456 = vmatmul.bf16.vlgmr.msra.gmra.mxu3 %v3219_v26  ;;  %v2103_v13 = vor.u32 %v2798_v5, %v2100_v6  ;;  %v1967_v21 = vor.u32 %v2764_v12, %v1964_v14  ;;  %v2820_v6 = vld [vmem:[#allocation5 + $0x264] sm:$0xf]  ;;  %v2316_v12 = vld [vmem:[#allocation5 + $0x368] sm:$0xf0]  ;;  %v2846_v55 = vld [vmem:[#allocation5 + $0x334] sm:$0xf] }
  0x7d   :  { %1500 = vmatpush.bf16.msrb.mxu3 %v2135_v17  ;;  %v2796_v17 = vld [vmem:[#allocation5 + $0x1a4] sm:$0xf]  ;;  %v2380_v14 = vld [vmem:[#allocation5 + $0x3e8] sm:$0xf0] }
  0x7e   :  { %1462 = vmatpush.bf16.msrb.mxu0 %v1935_v27  ;;  %v1892_v27 = vld [vmem:[#allocation5 + $0x18] sm:$0xf0] }
  0x7f   :  { %1475 = vmatpush.bf16.msrb.mxu1 %v1999_v28  ;;  %v2762_v28 = vld [vmem:[#allocation5 + $0x94] sm:$0xf]  ;;  %v1895_v40 = vor.u32 %v2746_v25, %v1892_v27  ;;  %v2244_v25 = vld [vmem:[#allocation5 + $0x2d8] sm:$0xf0] }
  0x80   :  { %1488 = vmatpush.bf16.msrb.mxu2 %v2063_v29  ;;  %v2095_v29 = vor.u32 %v2796_v17, %v2092_v19  ;;  %v1959_v46 = vor.u32 %v2762_v28, %v1956_v30  ;;  %v2319_v17 = vor.u32 %v2852_v11, %v2316_v12  ;;  %v2818_v19 = vld [vmem:[#allocation5 + $0x254] sm:$0xf]  ;;  %v2308_v28 = vld [vmem:[#allocation5 + $0x358] sm:$0xf0] }
  0x81   :  { %1501 = vmatpush.bf16.msrb.mxu3 %v2127_v34  ;;  %v2794_v34 = vld [vmem:[#allocation5 + $0x194] sm:$0xf]  ;;  %v2372_v30 = vld [vmem:[#allocation5 + $0x3d8] sm:$0xf0] }
  0x82   :  { %1463 = vmatpush.bf16.msrb.mxu0 %v1927_v47  ;;  %v2023_v47 = vor.u32 %v2778_v31, %v2020_v32  ;;  %v2087_v51 = vor.u32 %v2794_v34, %v2084_v37  ;;  %v2850_v27 = vld [vmem:[#allocation5 + $0x354] sm:$0xf]  ;;  %v2816_v37 = vld [vmem:[#allocation5 + $0x244] sm:$0xf]  ;;  %v2148_v11 = vld [vmem:[#allocation5 + $0x218] sm:$0xf0] }
  0x83   :  { %1476 = vmatpush.bf16.msrb.mxu1 %v1991_v48  ;;  %v2760_v48 = vld [vmem:[#allocation5 + $0x84] sm:$0xf]  ;;  %v2311_v34 = vor.u32 %v2850_v27, %v2308_v28  ;;  %v2826_v12 = vld [vmem:[#allocation5 + $0x294] sm:$0xf] }
  0x84   :  { %1489 = vmatpush.bf16.msrb.mxu2 %v2055_v49  ;;  %v1948_v49 = vld [vmem:[#allocation5 + $0x88] sm:$0xf0]  ;;  %v2824_v28 = vld [vmem:[#allocation5 + $0x284] sm:$0xf] }
  0x85   :  { %1502 = vmatpush.bf16.msrb.mxu3 %v2119_v53  ;;  %v2792_v53 = vld [vmem:[#allocation5 + $0x184] sm:$0xf] }
  0x86   :  { %1464 = vmatpush.bf16.msrb.mxu0 %v1919_v59  ;;  %v2260_v59 = vld [vmem:[#allocation5 + $0x2f8] sm:$0xf0] }
  0x87   :  { %1477 = vmatpush.bf16.msrb.mxu1 %v1983_v61  ;;  %v2324_v61 = vld [vmem:[#allocation5 + $0x378] sm:$0xf0]  ;;  %v2263_v4 = vor.u32 %v2838_v57, %v2260_v59  ;;  %v2862_v57 = vld [vmem:[#allocation5 + $0x3b4] sm:$0xf] }
  0x88   :  { %1490 = vmatpush.bf16.msrb.mxu2 %v2047_v62  ;;  %v1951_v62 = vor.u32 %v2760_v48, %v1948_v49  ;;  %v2327_v5 = vor.u32 %v2854_v60, %v2324_v61  ;;  %v2864_v48 = vld [vmem:[#allocation5 + $0x3c4] sm:$0xf]  ;;  %v2295_v61 = vor.u32 %v2846_v55, %v2292_v56  ;;  %v2444_v55 = vld [vmem:[#allocation5 + $0x468] sm:$0xf0] }
  0x89   :  { %1503 = vmatpush.bf16.msrb.mxu3 %v2111_v2  ;;  %v2079_v2 = vor.u32 %v2792_v53, %v2076_v54  ;;  %v2228_v54 = vld [vmem:[#allocation5 + $0x2b8] sm:$0xf0]  ;;  %v2900_v56 = vld [vmem:[#allocation5 + $0x4e4] sm:$0xf] }
  0x8a   :  { %1465 = vmatpush.bf16.msrb.mxu0 %v1911_v7  ;;  %v2188_v7 = vld [vmem:[#allocation5 + $0x268] sm:$0xf0]  ;;  %v2231_v60 = vor.u32 %v2830_v52, %v2228_v54  ;;  %v2884_v54 = vld [vmem:[#allocation5 + $0x464] sm:$0xf] }
  0x8b   :  { %1478 = vmatpush.bf16.msrb.mxu1 %v1975_v8  ;;  %v2836_v8 = vld [vmem:[#allocation5 + $0x2e4] sm:$0xf]  ;;  %v2191_v15 = vor.u32 %v2820_v6, %v2188_v7  ;;  %v2348_v6 = vld [vmem:[#allocation5 + $0x3a8] sm:$0xf0] }
  0x8c   :  { %1491 = vmatpush.bf16.msrb.mxu2 %v2039_v9  ;;  %v2391_v9 = vor.u32 %v2870_v0, %v2388_v1  ;;  %v2255_v16 = vor.u32 %v2836_v8, %v2252_v10  ;;  %v2828_v0 = vld [vmem:[#allocation5 + $0x2a4] sm:$0xf]  ;;  %v2810_v10 = vld [vmem:[#allocation5 + $0x214] sm:$0xf] }
  0x8d   :  { %1504 = vmatpush.bf16.msrb.mxu3 %v2103_v13  ;;  %v2868_v13 = vld [vmem:[#allocation5 + $0x3e4] sm:$0xf] }
  0x8e   :  { %1466 = vmatpush.bf16.msrb.mxu0 %v1903_v20  ;;  %v2180_v20 = vld [vmem:[#allocation5 + $0x258] sm:$0xf0] }
  0x8f   :  { %1479 = vmatpush.bf16.msrb.mxu1 %v1967_v21  ;;  %v2834_v21 = vld [vmem:[#allocation5 + $0x2d4] sm:$0xf]  ;;  %v2183_v31 = vor.u32 %v2818_v19, %v2180_v20  ;;  %v2340_v19 = vld [vmem:[#allocation5 + $0x398] sm:$0xf0]  ;;  %v2151_v20 = vor.u32 %v2810_v10, %v2148_v11 }
  0x90   :  { %1492 = vmatpush.bf16.msrb.mxu2 %v2031_v24  ;;  %v2383_v24 = vor.u32 %v2868_v13, %v2380_v14  ;;  %v2247_v32 = vor.u32 %v2834_v21, %v2244_v25  ;;  %v2212_v14 = vld [vmem:[#allocation5 + $0x298] sm:$0xf0]  ;;  %v2808_v21 = vld [vmem:[#allocation5 + $0x204] sm:$0xf] }
  0x91   :  { %1505 = vmatpush.bf16.msrb.mxu3 %v2095_v29  ;;  %v2866_v29 = vld [vmem:[#allocation5 + $0x3d4] sm:$0xf]  ;;  %v2215_v25 = vor.u32 %v2826_v12, %v2212_v14  ;;  %v2628_v10 = vld [vmem:[#allocation5 + $0x5d8] sm:$0xf0]  ;;  %v2880_v14 = vld [vmem:[#allocation5 + $0x444] sm:$0xf] }
  0x92   :  { %1467 = vmatpush.bf16.msrb.mxu0 %v1895_v40  ;;  %v2172_v40 = vld [vmem:[#allocation5 + $0x248] sm:$0xf0]  ;;  %v2375_v45 = vor.u32 %v2866_v29, %v2372_v30  ;;  %v2840_v30 = vld [vmem:[#allocation5 + $0x304] sm:$0xf] }
  0x93   :  { %1480 = vmatpush.bf16.msrb.mxu1 %v1959_v46  ;;  %v2848_v46 = vld [vmem:[#allocation5 + $0x344] sm:$0xf]  ;;  %v2204_v29 = vld [vmem:[#allocation5 + $0x288] sm:$0xf0] }
  0x94   :  { %1493 = vmatpush.bf16.msrb.mxu2 %v2023_v47  ;;  %v2300_v47 = vld [vmem:[#allocation5 + $0x348] sm:$0xf0] }
  0x95   :  { %1506 = vmatpush.bf16.msrb.mxu3 %v2087_v51  ;;  %v2164_v51 = vld [vmem:[#allocation5 + $0x238] sm:$0xf0] }
  0x96   :  { %1468 = vmatpush.bf16.msrb.mxu0 %v1887_v58  ;;  %v2356_v58 = vld [vmem:[#allocation5 + $0x3b8] sm:$0xf0]  ;;  %v2167_v59 = vor.u32 %v2814_v50, %v2164_v51 }
  0x97   :  { %1481 = vmatpush.bf16.msrb.mxu1 %v1951_v62  ;;  %v2812_v62 = vld [vmem:[#allocation5 + $0x224] sm:$0xf]  ;;  %v2359_v1 = vor.u32 %v2862_v57, %v2356_v58  ;;  %v2508_v58 = vld [vmem:[#allocation5 + $0x4e8] sm:$0xf0] }
  0x98   :  { %1494 = vmatpush.bf16.msrb.mxu2 %v2015_v63  ;;  %v2156_v63 = vld [vmem:[#allocation5 + $0x228] sm:$0xf0] }
  0x99   :  { %1507 = vmatpush.bf16.msrb.mxu3 %v2079_v2  ;;  %1469 = vmatmul.bf16.vlgmr.msrb.gmra.mxu0 %v3191_v36  ;;  %v2364_v36 = vld [vmem:[#allocation5 + $0x3c8] sm:$0xf0]  ;;  %v2159_v7 = vor.u32 %v2812_v62, %v2156_v63  ;;  %v2447_v63 = vor.u32 %v2884_v54, %v2444_v55  ;;  %v2874_v54 = vld [vmem:[#allocation5 + $0x414] sm:$0xf]  ;;  %v2404_v55 = vld [vmem:[#allocation5 + $0x418] sm:$0xf0] }
  0x9a   :  { %1513 = vmatpush.bf16.msra.mxu0 %v2199_v3  ;;  %1482 = vmatmul.bf16.vlgmr.msrb.gmra.mxu1 %v3195_v43  ;;  %v2303_v43 = vor.u32 %v2848_v46, %v2300_v47  ;;  %v2367_v53 = vor.u32 %v2864_v48, %v2364_v36  ;;  %v2220_v2 = vld [vmem:[#allocation5 + $0x2a8] sm:$0xf0]  ;;  %v2844_v3 = vld [vmem:[#allocation5 + $0x324] sm:$0xf]  ;;  %v2516_v46 = vld [vmem:[#allocation5 + $0x4f8] sm:$0xf0]  ;;  %v2207_v36 = vor.u32 %v2824_v28, %v2204_v29 }
  0x9b   :  { %1526 = vmatpush.bf16.msra.mxu1 %v2263_v4  ;;  %1495 = vmatmul.bf16.vlgmr.msrb.gmra.mxu2 %v3189_v35  ;;  %v2236_v35 = vld [vmem:[#allocation5 + $0x2c8] sm:$0xf0]  ;;  %v2223_v8 = vor.u32 %v2828_v0, %v2220_v2  ;;  %v2918_v47 = vld [vmem:[#allocation5 + $0x574] sm:$0xf]  ;;  %v2580_v48 = vld [vmem:[#allocation5 + $0x578] sm:$0xf0]  ;;  %v2511_v0 = vor.u32 %v2900_v56, %v2508_v58 }
  0x9c   :  { %1539 = vmatpush.bf16.msra.mxu2 %v2327_v5  ;;  %1508 = vmatmul.bf16.vlgmr.msrb.gmra.mxu3 %v3193_v42  ;;  %v2175_v42 = vor.u32 %v2816_v37, %v2172_v40  ;;  %v2239_v49 = vor.u32 %v2832_v44, %v2236_v35  ;;  %v2284_v4 = vld [vmem:[#allocation5 + $0x328] sm:$0xf0]  ;;  %v2860_v5 = vld [vmem:[#allocation5 + $0x3a4] sm:$0xf]  ;;  %v2886_v40 = vld [vmem:[#allocation5 + $0x474] sm:$0xf] }
  0x9d   :  { %1552 = vmatpush.bf16.msra.mxu3 %v2391_v9  ;;  %v2287_v9 = vor.u32 %v2844_v3, %v2284_v4  ;;  %v2351_v13 = vor.u32 %v2860_v5, %v2348_v6  ;;  %v2332_v37 = vld [vmem:[#allocation5 + $0x388] sm:$0xf0]  ;;  %v2452_v44 = vld [vmem:[#allocation5 + $0x478] sm:$0xf0]  ;;  %v2882_v2 = vld [vmem:[#allocation5 + $0x454] sm:$0xf] }
  0x9e   :  { %1514 = vmatpush.bf16.msra.mxu0 %v2191_v15  ;;  %v2842_v15 = vld [vmem:[#allocation5 + $0x314] sm:$0xf]  ;;  %v2455_v51 = vor.u32 %v2886_v40, %v2452_v44  ;;  %v2636_v62 = vld [vmem:[#allocation5 + $0x5e8] sm:$0xf0]  ;;  %v2436_v3 = vld [vmem:[#allocation5 + $0x458] sm:$0xf0] }
  0x9f   :  { %1527 = vmatpush.bf16.msra.mxu1 %v2255_v16  ;;  %v2276_v16 = vld [vmem:[#allocation5 + $0x318] sm:$0xf0]  ;;  %v2898_v4 = vld [vmem:[#allocation5 + $0x4d4] sm:$0xf]  ;;  %v2439_v11 = vor.u32 %v2882_v2, %v2436_v3  ;;  %v2872_v3 = vld [vmem:[#allocation5 + $0x404] sm:$0xf] }
  0xa0   :  { %1540 = vmatpush.bf16.msra.mxu2 %v2319_v17  ;;  %v2858_v17 = vld [vmem:[#allocation5 + $0x394] sm:$0xf]  ;;  %v2279_v27 = vor.u32 %v2842_v15, %v2276_v16  ;;  %v2500_v6 = vld [vmem:[#allocation5 + $0x4d8] sm:$0xf0]  ;;  %v2428_v15 = vld [vmem:[#allocation5 + $0x448] sm:$0xf0] }
  0xa1   :  { %1553 = vmatpush.bf16.msra.mxu3 %v2383_v24  ;;  %v2140_v24 = vld [vmem:[#allocation5 + $0x208] sm:$0xf0]  ;;  %v2503_v12 = vor.u32 %v2898_v4, %v2500_v6  ;;  %v2894_v28 = vld [vmem:[#allocation5 + $0x4b4] sm:$0xf]  ;;  %v2468_v58 = vld [vmem:[#allocation5 + $0x498] sm:$0xf0] }
  0xa2   :  { %1515 = vmatpush.bf16.msra.mxu0 %v2183_v31  ;;  %v2343_v31 = vor.u32 %v2858_v17, %v2340_v19  ;;  %v2143_v35 = vor.u32 %v2808_v21, %v2140_v24  ;;  %v2492_v17 = vld [vmem:[#allocation5 + $0x4c8] sm:$0xf0]  ;;  %v2912_v19 = vld [vmem:[#allocation5 + $0x544] sm:$0xf]  ;;  %v2890_v56 = vld [vmem:[#allocation5 + $0x494] sm:$0xf] }
  0xa3   :  { %1528 = vmatpush.bf16.msra.mxu1 %v2247_v32  ;;  %v2268_v32 = vld [vmem:[#allocation5 + $0x308] sm:$0xf0]  ;;  %v2928_v21 = vld [vmem:[#allocation5 + $0x5c4] sm:$0xf] }
  0xa4   :  { %1541 = vmatpush.bf16.msra.mxu2 %v2311_v34  ;;  %v2856_v34 = vld [vmem:[#allocation5 + $0x384] sm:$0xf]  ;;  %v2396_v4 = vld [vmem:[#allocation5 + $0x408] sm:$0xf0] }
  0xa5   :  { %1554 = vmatpush.bf16.msra.mxu3 %v2375_v45  ;;  %v2902_v45 = vld [vmem:[#allocation5 + $0x4f4] sm:$0xf]  ;;  %v2335_v50 = vor.u32 %v2856_v34, %v2332_v37  ;;  %v2612_v37 = vld [vmem:[#allocation5 + $0x5b8] sm:$0xf0] }
  0xa6   :  { %1516 = vmatpush.bf16.msra.mxu0 %v2175_v42  ;;  %v2271_v42 = vor.u32 %v2840_v30, %v2268_v32  ;;  %v2519_v52 = vor.u32 %v2902_v45, %v2516_v46  ;;  %v2484_v30 = vld [vmem:[#allocation5 + $0x4b8] sm:$0xf0]  ;;  %v2926_v34 = vld [vmem:[#allocation5 + $0x5b4] sm:$0xf]  ;;  %v2412_v46 = vld [vmem:[#allocation5 + $0x428] sm:$0xf0] }
  0xa7   :  { %1529 = vmatpush.bf16.msra.mxu1 %v2239_v49  ;;  %v2934_v49 = vld [vmem:[#allocation5 + $0x5f4] sm:$0xf]  ;;  %v2548_v32 = vld [vmem:[#allocation5 + $0x538] sm:$0xf0]  ;;  %v2487_v44 = vor.u32 %v2894_v28, %v2484_v30 }
  0xa8   :  { %1542 = vmatpush.bf16.msra.mxu2 %v2303_v43  ;;  %v2644_v43 = vld [vmem:[#allocation5 + $0x5f8] sm:$0xf0] }
  0xa9   :  { %1555 = vmatpush.bf16.msra.mxu3 %v2367_v53  ;;  %v2583_v53 = vor.u32 %v2918_v47, %v2580_v48  ;;  %v2647_v57 = vor.u32 %v2934_v49, %v2644_v43  ;;  %v2892_v47 = vld [vmem:[#allocation5 + $0x4a4] sm:$0xf]  ;;  %v2615_v48 = vor.u32 %v2926_v34, %v2612_v37  ;;  %v2540_v49 = vld [vmem:[#allocation5 + $0x528] sm:$0xf0]  ;;  %v2938_v37 = vld [vmem:[#allocation8 + $0x10] sm:$0xff] }
  0xaa   :  { %1517 = vmatpush.bf16.msra.mxu0 %v2167_v59  ;;  %v2916_v59 = vld [vmem:[#allocation5 + $0x564] sm:$0xf] }
  0xab   :  { %1530 = vmatpush.bf16.msra.mxu1 %v2231_v60  ;;  %v2572_v60 = vld [vmem:[#allocation5 + $0x568] sm:$0xf0]  ;;  %v2924_v43 = vld [vmem:[#allocation5 + $0x5a4] sm:$0xf] }
  0xac   :  { %1543 = vmatpush.bf16.msra.mxu2 %v2295_v61  ;;  %v2932_v61 = vld [vmem:[#allocation5 + $0x5e4] sm:$0xf] }
  0xad   :  { %1556 = vmatpush.bf16.msra.mxu3 %v2359_v1  ;;  %v2575_v1 = vor.u32 %v2916_v59, %v2572_v60  ;;  %v2639_v5 = vor.u32 %v2932_v61, %v2636_v62  ;;  %v2906_v59 = vld [vmem:[#allocation5 + $0x514] sm:$0xf]  ;;  %v2532_v60 = vld [vmem:[#allocation5 + $0x518] sm:$0xf0] }
  0xae   :  { %1518 = vmatpush.bf16.msra.mxu0 %v2159_v7  ;;  %v2914_v7 = vld [vmem:[#allocation5 + $0x554] sm:$0xf]  ;;  %v2596_v62 = vld [vmem:[#allocation5 + $0x598] sm:$0xf0]  ;;  %v2535_v2 = vor.u32 %v2906_v59, %v2532_v60 }
  0xaf   :  { %1531 = vmatpush.bf16.msra.mxu1 %v2223_v8  ;;  %v2564_v8 = vld [vmem:[#allocation5 + $0x558] sm:$0xf0]  ;;  %v2922_v61 = vld [vmem:[#allocation5 + $0x594] sm:$0xf] }
  0xb0   :  { %1544 = vmatpush.bf16.msra.mxu2 %v2287_v9  ;;  %v2930_v9 = vld [vmem:[#allocation5 + $0x5d4] sm:$0xf]  ;;  %v2599_v6 = vor.u32 %v2922_v61, %v2596_v62 }
  0xb1   :  { %1557 = vmatpush.bf16.msra.mxu3 %v2351_v13  ;;  %v2567_v13 = vor.u32 %v2914_v7, %v2564_v8  ;;  %v2631_v16 = vor.u32 %v2930_v9, %v2628_v10  ;;  %v2460_v7 = vld [vmem:[#allocation5 + $0x488] sm:$0xf0]  ;;  %v2904_v8 = vld [vmem:[#allocation5 + $0x504] sm:$0xf] }
  0xb2   :  { %1519 = vmatpush.bf16.msra.mxu0 %v2151_v20  ;;  %v2556_v20 = vld [vmem:[#allocation5 + $0x548] sm:$0xf0]  ;;  %v2920_v10 = vld [vmem:[#allocation5 + $0x584] sm:$0xf] }
  0xb3   :  { %1532 = vmatpush.bf16.msra.mxu1 %v2215_v25  ;;  %v2878_v25 = vld [vmem:[#allocation5 + $0x434] sm:$0xf]  ;;  %v2524_v9 = vld [vmem:[#allocation5 + $0x508] sm:$0xf0] }
  0xb4   :  { %1545 = vmatpush.bf16.msra.mxu2 %v2279_v27  ;;  %v2420_v27 = vld [vmem:[#allocation5 + $0x438] sm:$0xf0] }
  0xb5   :  { %1558 = vmatpush.bf16.msra.mxu3 %v2343_v31  ;;  %v2910_v31 = vld [vmem:[#allocation5 + $0x534] sm:$0xf]  ;;  %v2423_v40 = vor.u32 %v2878_v25, %v2420_v27 }
  0xb6   :  { %1520 = vmatpush.bf16.msra.mxu0 %v2143_v35  ;;  %v2551_v45 = vor.u32 %v2910_v31, %v2548_v32  ;;  %v2876_v35 = vld [vmem:[#allocation5 + $0x424] sm:$0xf]  ;;  %v2939_v31 = vld [vmem:[#allocation8 + $0x18] sm:$0xff] }
  0xb7   :  { %1533 = vmatpush.bf16.msra.mxu1 %v2207_v36  ;;  %v2476_v36 = vld [vmem:[#allocation5 + $0x4a8] sm:$0xf0] }
  0xb8   :  { %1546 = vmatpush.bf16.msra.mxu2 %v2271_v42  ;;  %v2908_v42 = vld [vmem:[#allocation5 + $0x524] sm:$0xf] }
  0xb9   :  { %1559 = vmatpush.bf16.msra.mxu3 %v2335_v50  ;;  %1521 = vmatmul.bf16.vlgmr.msra.gmra.mxu0 %v3203_v38  ;;  %v2620_v38 = vld [vmem:[#allocation5 + $0x5c8] sm:$0xf0] }
  0xba   :  { %1565 = vmatpush.bf16.msrb.mxu0 %v2455_v51  ;;  %1534 = vmatmul.bf16.vlgmr.msra.gmra.mxu1 %v3207_v41  ;;  %v2559_v41 = vor.u32 %v2912_v19, %v2556_v20  ;;  %v2623_v29 = vor.u32 %v2928_v21, %v2620_v38  ;;  %v2604_v50 = vld [vmem:[#allocation5 + $0x5a8] sm:$0xf0]  ;;  %v2415_v51 = vor.u32 %v2876_v35, %v2412_v46  ;;  %v2942_v21 = vld [vmem:[#allocation8 + $0x30] sm:$0xff] }
  0xbb   :  { %1578 = vmatpush.bf16.msrb.mxu1 %v2519_v52  ;;  %1547 = vmatmul.bf16.vlgmr.msra.gmra.mxu2 %v3201_v33  ;;  %v2896_v33 = vld [vmem:[#allocation5 + $0x4c4] sm:$0xf]  ;;  %v2479_v52 = vor.u32 %v2892_v47, %v2476_v36 }
  0xbc   :  { %1591 = vmatpush.bf16.msrb.mxu2 %v2583_v53  ;;  %1560 = vmatmul.bf16.vlgmr.msra.gmra.mxu3 %v3205_v39  ;;  %v2431_v39 = vor.u32 %v2880_v14, %v2428_v15  ;;  %v2495_v24 = vor.u32 %v2896_v33, %v2492_v17  ;;  %v2543_v53 = vor.u32 %v2908_v42, %v2540_v49  ;;  %v2943_v17 = vld [vmem:[#allocation8 + $0x38] sm:$0xff]  ;;  %v2936_v47 = vld [vmem:[#allocation8] sm:$0xff] }
  0xbd   :  { %1604 = vmatpush.bf16.msrb.mxu3 %v2647_v57  ;;  %v2607_v57 = vor.u32 %v2924_v43, %v2604_v50  ;;  %v2527_v15 = vor.u32 %v2904_v8, %v2524_v9  ;;  %v2948_v9 = vld [vmem:[#allocation8 + $0x60] sm:$0xff] }
  0xbe   :  { %1566 = vmatpush.bf16.msrb.mxu0 %v2447_v63  ;;  %v2407_v63 = vor.u32 %v2874_v54, %v2404_v55 }
  0xbf   :  { %1579 = vmatpush.bf16.msrb.mxu1 %v2511_v0  ;;  %v1314_v0 = vpop.f32.mrf.mxu0 }
  0xc0   :  { %1592 = vmatpush.bf16.msrb.mxu2 %v2575_v1  ;;  %v2471_v1 = vor.u32 %v2890_v56, %v2468_v58 }
  0xc1   :  { %1605 = vmatpush.bf16.msrb.mxu3 %v2639_v5  ;;  %v2888_v5 = vld [vmem:[#allocation5 + $0x484] sm:$0xf] }
  0xc2   :  { %1567 = vmatpush.bf16.msrb.mxu0 %v2439_v11  ;;  %v2588_v11 = vld [vmem:[#allocation5 + $0x588] sm:$0xf0]  ;;  %v2463_v14 = vor.u32 %v2888_v5, %v2460_v7 }
  0xc3   :  { %1580 = vmatpush.bf16.msrb.mxu1 %v2503_v12  ;;  %v1327_v12 = vpop.f32.mrf.mxu1  ;;  %v2591_v33 = vor.u32 %v2920_v10, %v2588_v11  ;;  %v2947_v10 = vld [vmem:[#allocation8 + $0x58] sm:$0xff] }
  0xc4   :  { %1593 = vmatpush.bf16.msrb.mxu2 %v2567_v13  ;;  %v2399_v13 = vor.u32 %v2872_v3, %v2396_v4  ;;  %v2950_v3 = vld [vmem:[#allocation8 + $0x70] sm:$0xff] }
  0xc5   :  { %1606 = vmatpush.bf16.msrb.mxu3 %v2631_v16  ;;  %v1340_v16 = vpop.f32.mrf.mxu2  ;;  %v1353_v19 = vpop.f32.mrf.mxu3 }
  0xc6   :  { %1568 = vmatpush.bf16.msrb.mxu0 %v2431_v39  ;;  %v3236_v39 = vld [vmem:[#allocation7] sm:$0x3] }
  0xc7   :  { %1581 = vmatpush.bf16.msrb.mxu1 %v2495_v24  ;;  %v1316_v20 = vpop.f32.mrf.mxu0  ;;  %v341_v25 = vperm.slane %v3236_v39, 0  ;;  %v342_v11 = vperm.slane %v3236_v39, 1 }
  0xc8   :  { %1594 = vmatpush.bf16.msrb.mxu2 %v2559_v41  ;;  %v2941_v41 = vld [vmem:[#allocation8 + $0x28] sm:$0xff]  ;;  %v2944_v20 = vld [vmem:[#allocation8 + $0x40] sm:$0xff] }
  0xc9   :  { %1607 = vmatpush.bf16.msrb.mxu3 %v2623_v29  ;;  %v2940_v29 = vld [vmem:[#allocation8 + $0x20] sm:$0xff]  ;;  %v1315_v30 = vadd.f32 %v1314_v0, %v341_v25  ;;  %v2951_v0 = vld [vmem:[#allocation8 + $0x78] sm:$0xff] }
  0xca   :  { %1569 = vmatpush.bf16.msrb.mxu0 %v2423_v40 }
  0xcb   :  { %1582 = vmatpush.bf16.msrb.mxu1 %v2487_v44  ;;  %v1329_v38 = vpop.f32.mrf.mxu1  ;;  %v2937_v44 = vld [vmem:[#allocation8 + $0x8] sm:$0xff] }
  0xcc   :  { %1595 = vmatpush.bf16.msrb.mxu2 %v2551_v45 }
  0xcd   :  { %1608 = vmatpush.bf16.msrb.mxu3 %v2615_v48  ;;  %v1342_v24 = vpop.f32.mrf.mxu2  ;;  %v1355_v27 = vpop.f32.mrf.mxu3 }
  0xce   :  { %1570 = vmatpush.bf16.msrb.mxu0 %v2415_v51 }
  0xcf   :  { %1583 = vmatpush.bf16.msrb.mxu1 %v2479_v52 }
  0xd0   :  { %1596 = vmatpush.bf16.msrb.mxu2 %v2543_v53 }
  0xd1   :  { %1609 = vmatpush.bf16.msrb.mxu3 %v2607_v57 }
  0xd2   :  { %1571 = vmatpush.bf16.msrb.mxu0 %v2407_v63 }
  0xd3   :  { %1584 = vmatpush.bf16.msrb.mxu1 %v2471_v1 }
  0xd4   :  { %1597 = vmatpush.bf16.msrb.mxu2 %v2535_v2 }
  0xd5   :  { %1610 = vmatpush.bf16.msrb.mxu3 %v2599_v6  ;;  %v2949_v6 = vld [vmem:[#allocation8 + $0x68] sm:$0xff] }
  0xd6   :  { %1572 = vmatpush.bf16.msrb.mxu0 %v2399_v13  ;;  %v1366_v28 = vpop.f32.mrf.mxu0 }
  0xd7   :  { %1585 = vmatpush.bf16.msrb.mxu1 %v2463_v14 }
  0xd8   :  { %1598 = vmatpush.bf16.msrb.mxu2 %v2527_v15 }
  0xd9   :  { %1611 = vmatpush.bf16.msrb.mxu3 %v2591_v33  ;;  %1573 = vmatmul.bf16.vlgmr.msrb.gmra.mxu0 %v3213_v18  ;;  %v1379_v18 = vpop.f32.mrf.mxu1  ;;  %v2945_v33 = vld [vmem:[#allocation8 + $0x48] sm:$0xff] }
  0xda   :  { %1751 = vmatpush.bf16.msra.mxu0 %v2943_v17  ;;  %1586 = vmatmul.bf16.vlgmr.msrb.gmra.mxu1 %v3217_v23  ;;  %v1328_v23 = vadd.f32 %v1327_v12, %v1315_v30  ;;  %v2946_v12 = vld [vmem:[#allocation8 + $0x50] sm:$0xff] }
  0xdb   :  { %1599 = vmatmul.bf16.vlgmr.msrb.gmra.mxu2 %v3215_v22  ;;  %1764 = vmatpush.bf16.msra.mxu1 %v2951_v0 }
  0xdc   :  { %1612 = vmatmul.bf16.vlgmr.msrb.gmra.mxu3 %v3219_v26  ;;  %v1341_v26 = vadd.f32 %v1340_v16, %v1328_v23 }
  0xde   :  { %1752 = vmatpush.bf16.msra.mxu0 %v2942_v21  ;;  %v1392_v32 = vpop.f32.mrf.mxu2  ;;  %v1368_v34 = vpop.f32.mrf.mxu0  ;;  %v1354_v45 = vadd.f32 %v1353_v19, %v1341_v26 }
  0xdf   :  { %v1405_v22 = vpop.f32.mrf.mxu3  ;;  %1765 = vmatpush.bf16.msra.mxu1 %v2950_v3 }
  0xe0   :  { %v1367_v48 = vadd.f32 %v1366_v28, %v1354_v45 }
  0xe1   :  { %v1381_v40 = vpop.f32.mrf.mxu1 }
  0xe2   :  { %1753 = vmatpush.bf16.msra.mxu0 %v2941_v41  ;;  %v1380_v36 = vadd.f32 %v1379_v18, %v1367_v48  ;;  %v2958_v48 = vld [vmem:[#allocation10 + $0x30] sm:$0xff] }
  0xe3   :  { %1766 = vmatpush.bf16.msra.mxu1 %v2949_v6 }
  0xe4   :  { %v1393_v42 = vadd.f32 %v1392_v32, %v1380_v36  ;;  %v2957_v36 = vld [vmem:[#allocation10 + $0x28] sm:$0xff] }
  0xe6   :  { %1754 = vmatpush.bf16.msra.mxu0 %v2940_v29  ;;  %v1394_v35 = vpop.f32.mrf.mxu2  ;;  %v1406_v49 = vadd.f32 %v1405_v22, %v1393_v42  ;;  %v2956_v42 = vld [vmem:[#allocation10 + $0x20] sm:$0xff] }
  0xe7   :  { %v1407_v46 = vpop.f32.mrf.mxu3  ;;  %1767 = vmatpush.bf16.msra.mxu1 %v2948_v9 }
  0xea   :  { %1755 = vmatpush.bf16.msra.mxu0 %v2939_v31 }
  0xeb   :  { %1768 = vmatpush.bf16.msra.mxu1 %v2947_v10 }
  0xee   :  { %1756 = vmatpush.bf16.msra.mxu0 %v2938_v37 }
  0xef   :  { %1769 = vmatpush.bf16.msra.mxu1 %v2946_v12 }
  0xf2   :  { %1757 = vmatpush.bf16.msra.mxu0 %v2937_v44 }
  0xf3   :  { %1770 = vmatpush.bf16.msra.mxu1 %v2945_v33 }
  0xf6   :  { %1758 = vmatpush.bf16.msra.mxu0 %v2936_v47  ;;  %v1418_v43 = vpop.f32.mrf.mxu0  ;;  %v2959_v47 = vld [vmem:[#allocation10 + $0x38] sm:$0xff] }
  0xf7   :  { %v1431_v50 = vpop.f32.mrf.mxu1  ;;  %v1419_v51 = vadd.f32 %v1418_v43, %v1406_v49  ;;  %1771 = vmatpush.bf16.msra.mxu1 %v2944_v20  ;;  %1847 = vmatpush.bf16.msra.mxu2 %v2959_v47  ;;  %v2955_v49 = vld [vmem:[#allocation10 + $0x18] sm:$0xff]  ;;  %v2954_v43 = vld [vmem:[#allocation10 + $0x10] sm:$0xff] }
  0xf9   :  { %v1432_v52 = vadd.f32 %v1431_v50, %v1419_v51 }
  0xfb   :  { %1848 = vmatpush.bf16.msra.mxu2 %v2958_v48 }
  0xfe   :  { %v1444_v53 = vpop.f32.mrf.mxu2  ;;  %v1420_v56 = vpop.f32.mrf.mxu0 }
  0xff   :  { %v1445_v54 = vadd.f32 %v1444_v53, %v1432_v52  ;;  %v1457_v55 = vpop.f32.mrf.mxu3  ;;  %v1433_v57 = vpop.f32.mrf.mxu1  ;;  %1849 = vmatpush.bf16.msra.mxu2 %v2957_v36  ;;  %v2953_v52 = vld [vmem:[#allocation10 + $0x8] sm:$0xff]  ;;  %v2952_v53 = vld [vmem:[#allocation10] sm:$0xff] }
 0x101   :  { %v1458_v58 = vadd.f32 %v1457_v55, %v1445_v54  ;;  %v2970_v54 = vld [vmem:[%s3254_s4] ss:$0 sm:$0xff] }
 0x103   :  { %v1617_v59 = vpack.c.bf16 %v1458_v58, %v1458_v58  ;;  %1850 = vmatpush.bf16.msra.mxu2 %v2956_v42 }
 0x105   :  { %1759 = vmatmul.bf16.vlgmr.msra.gmra.mxu0 %v1617_v59 }
 0x106   :  { %v1446_v60 = vpop.f32.mrf.mxu2 }
 0x107   :  { %v1459_v61 = vpop.f32.mrf.mxu3  ;;  %1851 = vmatpush.bf16.msra.mxu2 %v2955_v49 }
 0x108   :  { %v2971_v61 = vld [vmem:[%s3256_s6] ss:$0 sm:$0xff] }
 0x10b   :  { %1852 = vmatpush.bf16.msra.mxu2 %v2954_v43 }
 0x10f   :  { %1853 = vmatpush.bf16.msra.mxu2 %v2953_v52 }
 0x113   :  { %1854 = vmatpush.bf16.msra.mxu2 %v2952_v53 }
 0x116   :  { %v1470_v62 = vpop.f32.mrf.mxu0 }
 0x117   :  { %v1483_v63 = vpop.f32.mrf.mxu1  ;;  %v1471_v13 = vadd.f32 %v1470_v62, %v342_v11 }
 0x119   :  { %v1484_v16 = vadd.f32 %v1483_v63, %v1471_v13 }
 0x11e   :  { %v1496_v1 = vpop.f32.mrf.mxu2  ;;  %v1472_v4 = vpop.f32.mrf.mxu0 }
 0x11f   :  { %v1509_v2 = vpop.f32.mrf.mxu3  ;;  %v1485_v5 = vpop.f32.mrf.mxu1  ;;  %v1497_v21 = vadd.f32 %v1496_v1, %v1484_v16 }
 0x121   :  { %v1510_v41 = vadd.f32 %v1509_v2, %v1497_v21 }
 0x126   :  { %v1498_v7 = vpop.f32.mrf.mxu2 }
 0x127   :  { %v1511_v8 = vpop.f32.mrf.mxu3 }
 0x136   :  { %v1522_v14 = vpop.f32.mrf.mxu0 }
 0x137   :  { %v1535_v15 = vpop.f32.mrf.mxu1  ;;  %v1523_v28 = vadd.f32 %v1522_v14, %v1510_v41 }
 0x139   :  { %v1536_v39 = vadd.f32 %v1535_v15, %v1523_v28 }
 0x13e   :  { %v1548_v17 = vpop.f32.mrf.mxu2  ;;  %v1524_v38 = vpop.f32.mrf.mxu0 }
 0x13f   :  { %v1561_v19 = vpop.f32.mrf.mxu3  ;;  %v1537_v24 = vpop.f32.mrf.mxu1  ;;  %v1549_v29 = vadd.f32 %v1548_v17, %v1536_v39 }
 0x141   :  { %v1562_v30 = vadd.f32 %v1561_v19, %v1549_v29 }
 0x146   :  { %v1550_v25 = vpop.f32.mrf.mxu2 }
 0x147   :  { %v1563_v27 = vpop.f32.mrf.mxu3 }
 0x156   :  { %v1574_v18 = vpop.f32.mrf.mxu0 }
 0x157   :  { %v1587_v31 = vpop.f32.mrf.mxu1  ;;  %v1575_v23 = vadd.f32 %v1574_v18, %v1562_v30 }
 0x159   :  { %v1588_v32 = vadd.f32 %v1587_v31, %v1575_v23 }
 0x15e   :  { %v1600_v22 = vpop.f32.mrf.mxu2  ;;  %v1576_v26 = vpop.f32.mrf.mxu0 }
 0x15f   :  { %v1601_v34 = vadd.f32 %v1600_v22, %v1588_v32  ;;  %v1613_v37 = vpop.f32.mrf.mxu3  ;;  %v1589_v40 = vpop.f32.mrf.mxu1 }
 0x161   :  { %v1614_v44 = vadd.f32 %v1613_v37, %v1601_v34 }
 0x163   :  { %v1618_v45 = vpack.c.bf16 %v1614_v44, %v1614_v44 }
 0x165   :  { %1772 = vmatmul.bf16.vlgmr.msra.gmra.mxu1 %v1618_v45 }
 0x166   :  { %v1602_v35 = vpop.f32.mrf.mxu2 }
 0x167   :  { %v1615_v46 = vpop.f32.mrf.mxu3 }
 0x182   :  { %v1760_v50 = vpop.f32.mrf.mxu0 }
 0x183   :  { %v1761_v55 = vadd.f32 %v2970_v54, %v1760_v50 }
 0x18a   :  { %v1762_v51 = vpop.f32.mrf.mxu0 }
 0x1e2   :  { %v1773_v56 = vpop.f32.mrf.mxu1 }
 0x1e3   :  { %v1774_v57 = vadd.f32 %v1773_v56, %v1761_v55 }
 0x1e5   :  { %v1777_v58 = vmax.f32 %v1774_v57, 0.0 }
 0x1e7   :  { %v1778_v59 = vpack.c.bf16 %v1777_v58, %v1777_v58 }
 0x1e9   :  { %1855 = vmatmul.bf16.vlgmr.msra.gmra.mxu2 %v1778_v59 }
 0x1ea   :  { %v1775_v60 = vpop.f32.mrf.mxu1 }
 0x26c   :  { %v1856_v62 = vpop.f32.mrf.mxu2 }
 0x26d   :  { %v1857_v63 = vadd.f32 %v2971_v61, %v1856_v62 }
 0x26f   :  { %1860 = vst [vmem:[#allocation11] sm:$0x3] %v1857_v63 }
 0x270   :  { %1871 = dma.vmem_to_hbm [thread:$0]  %s1867_s30, 32, %s1869_s10, [#allocation4]  }
 0x274   :  { %v1858_v0 = vpop.f32.mrf.mxu2 }
 0x275   :  { %3122 = dma.done.wait [#allocation4], 32  }
 0x276   :  { %3123 = vsyncadd [#allocation4], 4294967264 }
 0x277   :  { %1876 = vsyncpa [#allocation3], 1 }
 0x278   :  { %1877 = vsyncpa [#allocation6], 1 }
 0x279   :  { %1878 = vsyncpa [#allocation9], 1 }
 0x27a   :  { %1879 = vsyncpa [#allocation4], 1 }

</bundles_post_ra>
